<compile_context>
chip_gen: v5e
topology: v5e:2x2
jax: 0.10.0
libtpu: 0.0.40
codegen_flags: <defaults>
</compile_context>

<pallas_src>
import jax
import jax.numpy as jnp
import numpy as np
from jax.experimental import pallas as pl
from jax.experimental.pallas import tpu as pltpu

LANE = 128
CIN_PAD = 16   # bf16 sublane quantum for the first contraction dim
TB = 8         # nodes per grid step (multiple of 8 for the output sublane tile)


def pointnet_kernel(x_ref, w1_ref, t1_ref, w2_ref, t2_ref, w3_ref, t3_ref, o_ref):
    """TB nodes per step: 3x (1x1-conv matmul + BN shift [+ReLU]) + max-pool."""
    tb, n, cin = x_ref.shape
    x = x_ref[...].reshape(tb * n, cin)                                  # bf16 (TB*N, Cin)

    # layer 1: Conv1d(Cin, 64, 1) + BN + ReLU  (BN scale pre-folded into w1)
    h1 = jnp.dot(x, w1_ref[...], preferred_element_type=jnp.float32)    # (TB*N, 64) f32
    h1 = jnp.maximum(h1 + t1_ref[...], 0.0)

    # layer 2: Conv1d(64, 128, 1) + BN + ReLU
    h2 = jnp.dot(h1.astype(jnp.bfloat16), w2_ref[...],
                 preferred_element_type=jnp.float32)                    # (TB*N, 128)
    h2 = jnp.maximum(h2 + t2_ref[...], 0.0)

    # layer 3: Conv1d(128, Fpad, 1) + BN (no ReLU, matching PointNetfeat)
    h3 = jnp.dot(h2.astype(jnp.bfloat16), w3_ref[...],
                 preferred_element_type=jnp.float32)                    # (TB*N, Fpad)
    h3 = h3 + t3_ref[...]

    # global max-pool over the point (sublane) axis -> lane-dense (TB, Fpad)
    o_ref[...] = jnp.max(h3.reshape(tb, n, h3.shape[-1]), axis=1)


def node_encoder_sgfn(x_ncw, params, tb=TB):
    """x_ncw: [B, dim_pts, N] float32 (PyTorch NCW). Returns [B, out_size]."""
    B, cin, n = x_ncw.shape
    w1, t1 = params["w1"], params["t1"]
    w2, t2 = params["w2"], params["t2"]
    w3, t3 = params["w3"], params["t3"]
    cin_pad, c1 = w1.shape
    c2 = w2.shape[1]
    fpad = w3.shape[1]
    out_size = params["out_size"]

    # Wrapper-side layout plumbing: NCW -> NWC, channel pad to 16, bf16 cast,
    # batch pad to a multiple of TB (padded rows are sliced away afterwards).
    b_pad = pl.cdiv(B, tb) * tb
    x_nwc = jnp.transpose(x_ncw, (0, 2, 1)).astype(jnp.bfloat16)
    x_nwc = jnp.pad(x_nwc, ((0, b_pad - B), (0, 0), (0, cin_pad - cin)))

    def const(shape):
        return pl.BlockSpec(shape, lambda b: (0,) * len(shape))

    grid_spec = pltpu.PrefetchScalarGridSpec(
        num_scalar_prefetch=0,
        grid=(b_pad // tb,),
        in_specs=[
            pl.BlockSpec((tb, n, cin_pad), lambda b: (b, 0, 0)),  # x tile (double-buffered)
            const((cin_pad, c1)), const((1, c1)),                 # w1 (bf16), shift1 (f32)
            const((c1, c2)), const((1, c2)),                      # w2, shift2
            const((c2, fpad)), const((1, fpad)),                  # w3 (padded), shift3
        ],
        out_specs=pl.BlockSpec((tb, fpad), lambda b: (b, 0)),
    )

    flops = 2 * b_pad * n * (cin_pad * c1 + c1 * c2 + c2 * fpad)
    bytes_accessed = (x_nwc.size * 2 + b_pad * fpad * 4
                      + (w1.size + w2.size + w3.size) * 2
                      + (t1.size + t2.size + t3.size) * 4)

    out = pl.pallas_call(
        pointnet_kernel,
        out_shape=jax.ShapeDtypeStruct((b_pad, fpad), jnp.float32),
        grid_spec=grid_spec,
        compiler_params=pltpu.CompilerParams(
            dimension_semantics=("parallel",),      # megacore sharding on v7x
        ),
        cost_estimate=pl.CostEstimate(
            flops=flops, transcendentals=0, bytes_accessed=bytes_accessed),
    )(x_nwc, w1, t1, w2, t2, w3, t3)

    return out[:B, :out_size]


def make_raw_params(dim_pts, out_size, key):
    """Deterministic Conv1d(k=1) + BatchNorm1d parameters (PyTorch layout)."""
    def layer(k, c_in, c_out):
        kw, kb, kg, kbe, km, kv = jax.random.split(k, 6)
        return dict(
            w=0.1 * jax.random.normal(kw, (c_out, c_in), jnp.float32),   # [out, in]
            b=0.1 * jax.random.normal(kb, (c_out,), jnp.float32),
            gamma=1.0 + 0.1 * jax.random.normal(kg, (c_out,), jnp.float32),
            beta=0.1 * jax.random.normal(kbe, (c_out,), jnp.float32),
            mean=0.1 * jax.random.normal(km, (c_out,), jnp.float32),
            var=jax.random.uniform(kv, (c_out,), jnp.float32,
                                   minval=0.5, maxval=1.5),
        )
    k1, k2, k3 = jax.random.split(key, 3)
    return dict(l1=layer(k1, dim_pts, 64),
                l2=layer(k2, 64, 128),
                l3=layer(k3, 128, out_size))


def _fold_layer(p, pad_in=None, pad_out=None, eps=1e-5):
    """Fold eval-mode BN into (bf16 weight (Cin, Cout), f32 shift (1, Cout))."""
    scale = p["gamma"] / jnp.sqrt(p["var"] + eps)
    shift = (p["b"] - p["mean"]) * scale + p["beta"]
    w = p["w"] * scale[:, None]                     # fold BN scale into weight rows
    if pad_in is not None and pad_in > w.shape[1]:
        w = jnp.pad(w, ((0, 0), (0, pad_in - w.shape[1])))
    if pad_out is not None and pad_out > w.shape[0]:
        extra = pad_out - w.shape[0]
        w = jnp.pad(w, ((0, extra), (0, 0)))
        shift = jnp.pad(shift, ((0, extra),))
    # transpose to (Cin, Cout): channels-on-lanes compute layout
    return w.T.astype(jnp.bfloat16), shift.reshape(1, -1).astype(jnp.float32)


def prepare_params(raw):
    out_size = raw["l3"]["w"].shape[0]
    fpad = max(LANE, ((out_size + LANE - 1) // LANE) * LANE)
    w1, t1 = _fold_layer(raw["l1"], pad_in=CIN_PAD)
    w2, t2 = _fold_layer(raw["l2"])
    w3, t3 = _fold_layer(raw["l3"], pad_out=fpad)
    return dict(w1=w1, t1=t1, w2=w2, t2=t2, w3=w3, t3=t3, out_size=out_size)


def reference(x_ncw, raw, eps=1e-5):
    """Pure-JAX f32 reference mirroring the PyTorch forward (eval-mode BN)."""
    def layer(h, p, relu):
        y = jnp.einsum("oi,bin->bon", p["w"], h) + p["b"][None, :, None]
        scale = p["gamma"] / jnp.sqrt(p["var"] + eps)
        y = (y - p["mean"][None, :, None]) * scale[None, :, None] + p["beta"][None, :, None]
        return jnp.maximum(y, 0.0) if relu else y
    h = layer(x_ncw, raw["l1"], True)
    h = layer(h, raw["l2"], True)
    h = layer(h, raw["l3"], False)
    return jnp.max(h, axis=2)                                   # [B, out]


if __name__ == "__main__":
    # cfg: use_rgb=True, use_normal=True -> dim_pts = 9; node_feature_dim = 32
    B, dim_pts, n_points, out_size = 2, 9, 128, 32

    key = jax.random.PRNGKey(0)
    k_x, k_p = jax.random.split(key)
    x = jax.random.normal(k_x, (B, dim_pts, n_points), jnp.float32)  # NCW like PyTorch
    raw = make_raw_params(dim_pts, out_size, k_p)
    kparams = prepare_params(raw)

    out = jax.block_until_ready(node_encoder_sgfn(x, kparams))
    ref = jax.block_until_ready(reference(x, raw))

    assert out.shape == (B, out_size), out.shape
    # bf16 MXU operands (f32 accumulation) -> relaxed tolerance vs. f32 reference.
    np.testing.assert_allclose(np.asarray(out), np.asarray(ref), rtol=5e-2, atol=3e-2)

    # TODO(synk): training-mode BatchNorm (batch statistics + running-stat update)
    # is not reproduced; BN is folded as an eval-mode per-channel affine.
    # TODO(synk): no validity mask on the max-pool; padded/dummy points (if the
    # SGFN pipeline uses them) would leak into the max.
    print("KERNEL_OK")
</pallas_src>

<mosaic_0001>
module attributes {stable_mosaic.version = 11 : i64} {
  func.func @pointnet_kernel(%arg0: i32, %arg1: memref<8x128x16xbf16, #tpu.memory_space<vmem>>, %arg2: memref<16x64xbf16, #tpu.memory_space<vmem>>, %arg3: memref<1x64xf32, #tpu.memory_space<vmem>>, %arg4: memref<64x128xbf16, #tpu.memory_space<vmem>>, %arg5: memref<1x128xf32, #tpu.memory_space<vmem>>, %arg6: memref<128x128xbf16, #tpu.memory_space<vmem>>, %arg7: memref<1x128xf32, #tpu.memory_space<vmem>>, %arg8: memref<8x128xf32, #tpu.memory_space<vmem>>) attributes {dimension_semantics = [#tpu.dimension_semantics<parallel>], iteration_bounds = array<i64: 1>, scalar_prefetch = 0 : i64, scratch_operands = 0 : i64, tpu.core_type = #tpu.core_type<tc>, window_params = [{transform_indices = @transform_0, window_bounds = array<i64: 8, 128, 16>}, {pipeline_mode = #tpu.pipeline_mode<synchronous>, transform_indices = @transform_1, window_bounds = array<i64: 16, 64>}, {pipeline_mode = #tpu.pipeline_mode<synchronous>, transform_indices = @transform_2, window_bounds = array<i64: 1, 64>}, {pipeline_mode = #tpu.pipeline_mode<synchronous>, transform_indices = @transform_3, window_bounds = array<i64: 64, 128>}, {pipeline_mode = #tpu.pipeline_mode<synchronous>, transform_indices = @transform_4, window_bounds = array<i64: 1, 128>}, {pipeline_mode = #tpu.pipeline_mode<synchronous>, transform_indices = @transform_5, window_bounds = array<i64: 128, 128>}, {pipeline_mode = #tpu.pipeline_mode<synchronous>, transform_indices = @transform_6, window_bounds = array<i64: 1, 128>}, {transform_indices = @transform_7, window_bounds = array<i64: 8, 128>}]} {
    %c0 = arith.constant 0 : index
    %c0_0 = arith.constant 0 : index
    %c0_1 = arith.constant 0 : index
    %0 = vector.load %arg1[%c0, %c0_0, %c0_1] : memref<8x128x16xbf16, #tpu.memory_space<vmem>>, vector<8x128x16xbf16>
    %1 = vector.shape_cast %0 : vector<8x128x16xbf16> to vector<1024x16xbf16>
    %c0_2 = arith.constant 0 : index
    %c0_3 = arith.constant 0 : index
    %2 = vector.load %arg2[%c0_2, %c0_3] : memref<16x64xbf16, #tpu.memory_space<vmem>>, vector<16x64xbf16>
    %cst = arith.constant dense<0.000000e+00> : vector<1024x64xf32>
    %3 = tpu.matmul %1, %2, %cst {dimension_numbers = #tpu.dot_dimension_numbers<[1], [0], [0], [1], [0, 0, 1, 1], [], []>} : vector<1024x16xbf16>, vector<16x64xbf16>, vector<1024x64xf32> -> vector<1024x64xf32>
    %c0_4 = arith.constant 0 : index
    %c0_5 = arith.constant 0 : index
    %4 = vector.load %arg3[%c0_4, %c0_5] : memref<1x64xf32, #tpu.memory_space<vmem>>, vector<1x64xf32>
    %5 = vector.broadcast %4 : vector<1x64xf32> to vector<1024x64xf32>
    %6 = arith.addf %3, %5 : vector<1024x64xf32>
    %cst_6 = arith.constant 0.000000e+00 : f32
    %7 = vector.broadcast %cst_6 : f32 to vector<1024x64xf32>
    %8 = arith.maximumf %6, %7 : vector<1024x64xf32>
    %9 = arith.truncf %8 : vector<1024x64xf32> to vector<1024x64xbf16>
    %c0_7 = arith.constant 0 : index
    %c0_8 = arith.constant 0 : index
    %10 = vector.load %arg4[%c0_7, %c0_8] : memref<64x128xbf16, #tpu.memory_space<vmem>>, vector<64x128xbf16>
    %cst_9 = arith.constant dense<0.000000e+00> : vector<1024x128xf32>
    %11 = tpu.matmul %9, %10, %cst_9 {dimension_numbers = #tpu.dot_dimension_numbers<[1], [0], [0], [1], [0, 0, 1, 1], [], []>} : vector<1024x64xbf16>, vector<64x128xbf16>, vector<1024x128xf32> -> vector<1024x128xf32>
    %c0_10 = arith.constant 0 : index
    %c0_11 = arith.constant 0 : index
    %12 = vector.load %arg5[%c0_10, %c0_11] : memref<1x128xf32, #tpu.memory_space<vmem>>, vector<1x128xf32>
    %13 = vector.broadcast %12 : vector<1x128xf32> to vector<1024x128xf32>
    %14 = arith.addf %11, %13 : vector<1024x128xf32>
    %cst_12 = arith.constant 0.000000e+00 : f32
    %15 = vector.broadcast %cst_12 : f32 to vector<1024x128xf32>
    %16 = arith.maximumf %14, %15 : vector<1024x128xf32>
    %17 = arith.truncf %16 : vector<1024x128xf32> to vector<1024x128xbf16>
    %c0_13 = arith.constant 0 : index
    %c0_14 = arith.constant 0 : index
    %18 = vector.load %arg6[%c0_13, %c0_14] : memref<128x128xbf16, #tpu.memory_space<vmem>>, vector<128x128xbf16>
    %cst_15 = arith.constant dense<0.000000e+00> : vector<1024x128xf32>
    %19 = tpu.matmul %17, %18, %cst_15 {dimension_numbers = #tpu.dot_dimension_numbers<[1], [0], [0], [1], [0, 0, 1, 1], [], []>} : vector<1024x128xbf16>, vector<128x128xbf16>, vector<1024x128xf32> -> vector<1024x128xf32>
    %c0_16 = arith.constant 0 : index
    %c0_17 = arith.constant 0 : index
    %20 = vector.load %arg7[%c0_16, %c0_17] : memref<1x128xf32, #tpu.memory_space<vmem>>, vector<1x128xf32>
    %21 = vector.broadcast %20 : vector<1x128xf32> to vector<1024x128xf32>
    %22 = arith.addf %19, %21 : vector<1024x128xf32>
    %23 = vector.shape_cast %22 : vector<1024x128xf32> to vector<8x128x128xf32>
    %cst_18 = arith.constant dense<0xFF800000> : vector<8x128xf32>
    %24 = vector.multi_reduction <maximumf>, %23, %cst_18 [1] : vector<8x128x128xf32> to vector<8x128xf32>
    %c0_19 = arith.constant 0 : index
    %c0_20 = arith.constant 0 : index
    %25 = vector.load %arg8[%c0_19, %c0_20] : memref<8x128xf32, #tpu.memory_space<vmem>>, vector<8x128xf32>
    tpu.vector_store %arg8[%c0_19, %c0_20], %24 {strides = array<i32>} : memref<8x128xf32, #tpu.memory_space<vmem>>, vector<8x128xf32>,
    return
  }
  func.func @transform_0(%arg0: i32) -> (i32, i32, i32) {
    %c0_i32 = arith.constant 0 : i32
    %c0_i32_0 = arith.constant 0 : i32
    %c0_i32_1 = arith.constant 0 : i32
    return %arg0, %c0_i32, %c0_i32_0 : i32, i32, i32
  }
  func.func @transform_1(%arg0: i32) -> (i32, i32) {
    %c0_i32 = arith.constant 0 : i32
    %c0_i32_0 = arith.constant 0 : i32
    %c0_i32_1 = arith.constant 0 : i32
    return %c0_i32, %c0_i32_0 : i32, i32
  }
  func.func @transform_2(%arg0: i32) -> (i32, i32) {
    %c0_i32 = arith.constant 0 : i32
    %c0_i32_0 = arith.constant 0 : i32
    %c0_i32_1 = arith.constant 0 : i32
    return %c0_i32, %c0_i32_0 : i32, i32
  }
  func.func @transform_3(%arg0: i32) -> (i32, i32) {
    %c0_i32 = arith.constant 0 : i32
    %c0_i32_0 = arith.constant 0 : i32
    %c0_i32_1 = arith.constant 0 : i32
    return %c0_i32, %c0_i32_0 : i32, i32
  }
  func.func @transform_4(%arg0: i32) -> (i32, i32) {
    %c0_i32 = arith.constant 0 : i32
    %c0_i32_0 = arith.constant 0 : i32
    %c0_i32_1 = arith.constant 0 : i32
    return %c0_i32, %c0_i32_0 : i32, i32
  }
  func.func @transform_5(%arg0: i32) -> (i32, i32) {
    %c0_i32 = arith.constant 0 : i32
    %c0_i32_0 = arith.constant 0 : i32
    %c0_i32_1 = arith.constant 0 : i32
    return %c0_i32, %c0_i32_0 : i32, i32
  }
  func.func @transform_6(%arg0: i32) -> (i32, i32) {
    %c0_i32 = arith.constant 0 : i32
    %c0_i32_0 = arith.constant 0 : i32
    %c0_i32_1 = arith.constant 0 : i32
    return %c0_i32, %c0_i32_0 : i32, i32
  }
  func.func @transform_7(%arg0: i32) -> (i32, i32) {
    %c0_i32 = arith.constant 0 : i32
    %c0_i32_0 = arith.constant 0 : i32
    return %arg0, %c0_i32 : i32, i32
  }
}

</mosaic_0001>

<bundles_post_ra>
// kernel: tpu_custom_call.1
= control target key start
LH: loop header
LB: loop body
LE: loop exit
PB: predicated region body
PF: predicated region fallthrough
CT: control target
= control target key end

     0   :  { %vm488_vm0 = vcmask 130048   ;;  %s4173_s0 = inlined_call_operand.vmem [shape: bf16[8,128,16], index: 0, kind: input, shape index: {}]   ;;  %s4174_s1 = inlined_call_operand.vmem [shape: bf16[16,64], index: 1, kind: input, shape index: {}]   ;;  %s4175_s2 = inlined_call_operand.vmem [shape: f32[1,64], index: 2, kind: input, shape index: {}]   ;;  %s4176_s3 = inlined_call_operand.vmem [shape: bf16[64,128], index: 3, kind: input, shape index: {}]   ;;  %s4177_s4 = inlined_call_operand.vmem [shape: f32[1,128], index: 4, kind: input, shape index: {}]   ;;  %s4178_s5 = inlined_call_operand.vmem [shape: bf16[128,128], index: 5, kind: input, shape index: {}]   ;;  %s4179_s6 = inlined_call_operand.vmem [shape: f32[1,128], index: 6, kind: input, shape index: {}]   ;;  %s4180_s7 = inlined_call_operand.hbm [shape: f32[8,128], index: 7, kind: output, shape index: {}]  }
   0x1   :  { %v3057_v0 = vld [vmem:[%s4174_s1] sm:$0xff] }
   0x2   :  { %v2993_v1 = vld [vmem:[%s4173_s0] sm:$0xff]  ;;  %688 = vmatpush.bf16.msra.mxu0 %v3057_v0  ;;  %3070 = vmatpush.bf16.msra.mxu3 %v3057_v0 }
   0x3   :  { %12 = vsyncpa [#allocation3], 0  ;;  %v2994_v2 = vld [vmem:[%s4173_s0 + $0x8] sm:$0xff]  ;;  %v2995_v3 = vld [vmem:[%s4173_s0 + $0x10] sm:$0xff]  ;;  %vm1238_vm1 = vcmask 523264   ;;  %vm2525_vm2 = vcmask 1041409  }
   0x4   :  { %v2996_v4 = vld [vmem:[%s4173_s0 + $0x18] sm:$0xff]  ;;  %v2997_v5 = vld [vmem:[%s4173_s0 + $0x20] sm:$0xff]  ;;  %v2998_v6 = vld [vmem:[%s4173_s0 + $0x28] sm:$0xff]  ;;  %vm2527_vm3 = vcmask 1042434   ;;  %vm2529_vm4 = vcmask 1043459   ;;  %vm2531_vm5 = vcmask 1044484  }
   0x5   :  { %2817 = vmatmul.msk.bf16.vlgmr.msra.gmra.mxu0 %vm488_vm0, %v2993_v1  ;;  %v3061_v7 = vld [vmem:[%s4176_s3 + $0x18] sm:$0xff]  ;;  %v2999_v8 = vld [vmem:[%s4173_s0 + $0x30] sm:$0xff]  ;;  %v3059_v10 = vld [vmem:[%s4176_s3 + $0x8] sm:$0xff]  ;;  %vm2533_vm6 = vcmask 1045509   ;;  %vm2535_vm7 = vcmask 1046534   ;;  %s2548_s17 = sshll.u32 %s4180_s7, 4  ;;  %s2549_s17 = int_to_ptr.hbm [resolvable:$true] %s2548_s17 }
   0x6   :  { %1435 = vmatpush.bf16.msra.mxu1 %v3061_v7  ;;  %3071 = vmatpush.bf16.msrb.mxu3 %v3061_v7  ;;  %v3060_v9 = vld [vmem:[%s4176_s3 + $0x10] sm:$0xff]  ;;  %v3058_v11 = vld [vmem:[%s4176_s3] sm:$0xff]  ;;  %v3000_v12 = vld [vmem:[%s4173_s0 + $0x38] sm:$0xff]  ;;  %vm2537_vm8 = vcmask 1047559  }
   0x7   :  { %v3001_v13 = vld [vmem:[%s4173_s0 + $0x40] sm:$0xff]  ;;  %v3002_v22 = vld [vmem:[%s4173_s0 + $0x48] sm:$0xff]  ;;  %v3003_v30 = vld [vmem:[%s4173_s0 + $0x50] sm:$0xff] }
   0x8   :  { %v3213_v15 = vld [vmem:[%s4175_s2] ss:$0 sm:$0xff]  ;;  %v3004_v38 = vld [vmem:[%s4173_s0 + $0x58] sm:$0xff]  ;;  %v3006_v54 = vld [vmem:[%s4173_s0 + $0x68] sm:$0xff] }
   0x9   :  { %v3005_v46 = vld [vmem:[%s4173_s0 + $0x60] sm:$0xff]  ;;  %v3256_v59 = vld [vmem:[%s4178_s5 + $0x38] sm:$0xff]  ;;  %v3262_v63 = vld [vmem:[%s4178_s5 + $0x30] sm:$0xff] }
   0xa   :  { %1436 = vmatpush.bf16.msra.mxu1 %v3060_v9  ;;  %3072 = vmatpush.bf16.msrb.mxu3 %v3060_v9  ;;  %v3007_v0 = vld [vmem:[%s4173_s0 + $0x70] sm:$0xff]  ;;  %v3287_v7 = vld [vmem:[%s4178_s5 + $0x18] sm:$0xff] }
   0xb   :  { %2020 = vmatpush.bf16.msra.mxu2 %v3256_v59 }
   0xe   :  { %1437 = vmatpush.bf16.msra.mxu1 %v3059_v10  ;;  %3073 = vmatpush.bf16.msrb.mxu3 %v3059_v10 }
   0xf   :  { %2021 = vmatpush.bf16.msra.mxu2 %v3262_v63 }
  0x12   :  { %1438 = vmatpush.bf16.msra.mxu1 %v3058_v11  ;;  %3074 = vmatpush.bf16.msrb.mxu3 %v3058_v11  ;;  %v3293_v11 = vld [vmem:[%s4178_s5 + $0x10] sm:$0xff] }
  0x15   :  { %2818 = vmatmul.msk.bf16.gmra.mxu0 %vm488_vm0, %v2994_v2  ;;  %v3272_v2 = vld [vmem:[%s4178_s5 + $0x28] sm:$0xff] }
  0x16   :  { %2022 = vmatpush.bf16.msra.mxu2 %v3272_v2 }
  0x25   :  { %2819 = vmatmul.msk.bf16.gmra.mxu0 %vm488_vm0, %v2995_v3  ;;  %v3279_v3 = vld [vmem:[%s4178_s5 + $0x20] sm:$0xff] }
  0x26   :  { %2023 = vmatpush.bf16.msra.mxu2 %v3279_v3 }
  0x2a   :  { %2024 = vmatpush.bf16.msra.mxu2 %v3287_v7 }
  0x2e   :  { %2025 = vmatpush.bf16.msra.mxu2 %v3293_v11 }
  0x35   :  { %2820 = vmatmul.msk.bf16.gmra.mxu0 %vm488_vm0, %v2996_v4 }
  0x45   :  { %2821 = vmatmul.msk.bf16.gmra.mxu0 %vm488_vm0, %v2997_v5 }
  0x55   :  { %2822 = vmatmul.msk.bf16.gmra.mxu0 %vm488_vm0, %v2998_v6 }
  0x65   :  { %2823 = vmatmul.msk.bf16.gmra.mxu0 %vm488_vm0, %v2999_v8 }
  0x75   :  { %2824 = vmatmul.msk.bf16.gmra.mxu0 %vm488_vm0, %v3000_v12  ;;  %v3008_v12 = vld [vmem:[%s4173_s0 + $0x78] sm:$0xff] }
  0x82   :  { %v690_v14 = vpop.f32.mrf.mxu0 }
  0x83   :  { %v691_v16 = vadd.f32 %v3213_v15, %v690_v14  ;;  %v3303_v14 = vld [vmem:[%s4178_s5 + $0x8] sm:$0xff] }
  0x84   :  { %2026 = vmatpush.bf16.msra.mxu2 %v3303_v14 }
  0x85   :  { %2825 = vmatmul.msk.bf16.gmra.mxu0 %vm488_vm0, %v3001_v13  ;;  %v1010_v19 = vmax.f32 %v691_v16, 0.0  ;;  %v3310_v16 = vld [vmem:[%s4178_s5] sm:$0xff] }
  0x88   :  { %2027 = vmatpush.bf16.msra.mxu2 %v3310_v16 }
  0x8a   :  { %v692_v17 = vpop.f32.mrf.mxu0 }
  0x8b   :  { %v693_v18 = vadd.f32 %v3213_v15, %v692_v17 }
  0x8d   :  { %v1011_v20 = vmax.f32 %v693_v18, 0.0 }
  0x8f   :  { %v1138_v21 = vpack.c.bf16 %v1011_v20, %v1010_v19 }
  0x91   :  { %2897 = vmatmul.msk.bf16.vlgmr.msra.gmra.mxu1 %vm1238_vm1, %v1138_v21 }
  0x92   :  { %v695_v23 = vpop.f32.mrf.mxu0 }
  0x93   :  { %v696_v24 = vadd.f32 %v3213_v15, %v695_v23  ;;  %v3009_v23 = vld [vmem:[%s4173_s0 + $0x80] sm:$0xff] }
  0x95   :  { %2826 = vmatmul.msk.bf16.gmra.mxu0 %vm488_vm0, %v3002_v22  ;;  %v1012_v27 = vmax.f32 %v696_v24, 0.0 }
  0x9a   :  { %v697_v25 = vpop.f32.mrf.mxu0 }
  0x9b   :  { %v698_v26 = vadd.f32 %v3213_v15, %v697_v25 }
  0x9d   :  { %v1013_v28 = vmax.f32 %v698_v26, 0.0 }
  0x9f   :  { %v1139_v29 = vpack.c.bf16 %v1013_v28, %v1012_v27 }
  0xa1   :  { %2898 = vmatmul.msk.bf16.gmra.mxu1 %vm1238_vm1, %v1139_v29 }
  0xa2   :  { %v700_v31 = vpop.f32.mrf.mxu0 }
  0xa3   :  { %v701_v32 = vadd.f32 %v3213_v15, %v700_v31 }
  0xa5   :  { %2827 = vmatmul.msk.bf16.gmra.mxu0 %vm488_vm0, %v3003_v30  ;;  %v1014_v35 = vmax.f32 %v701_v32, 0.0  ;;  %v3325_v32 = vld [vmem:[%s4177_s4] ss:$0 sm:$0xff] }
  0xaa   :  { %v702_v33 = vpop.f32.mrf.mxu0 }
  0xab   :  { %v703_v34 = vadd.f32 %v3213_v15, %v702_v33  ;;  %v3010_v33 = vld [vmem:[%s4173_s0 + $0x88] sm:$0xff] }
  0xad   :  { %v1015_v36 = vmax.f32 %v703_v34, 0.0 }
  0xaf   :  { %v1140_v37 = vpack.c.bf16 %v1015_v36, %v1014_v35 }
  0xb1   :  { %2899 = vmatmul.msk.bf16.gmra.mxu1 %vm1238_vm1, %v1140_v37 }
  0xb2   :  { %v705_v39 = vpop.f32.mrf.mxu0 }
  0xb3   :  { %v706_v40 = vadd.f32 %v3213_v15, %v705_v39 }
  0xb5   :  { %2828 = vmatmul.msk.bf16.gmra.mxu0 %vm488_vm0, %v3004_v38  ;;  %v1016_v43 = vmax.f32 %v706_v40, 0.0 }
  0xba   :  { %v707_v41 = vpop.f32.mrf.mxu0 }
  0xbb   :  { %v708_v42 = vadd.f32 %v3213_v15, %v707_v41 }
  0xbd   :  { %v1017_v44 = vmax.f32 %v708_v42, 0.0 }
  0xbf   :  { %v1141_v45 = vpack.c.bf16 %v1017_v44, %v1016_v43 }
  0xc1   :  { %2900 = vmatmul.msk.bf16.gmra.mxu1 %vm1238_vm1, %v1141_v45 }
  0xc2   :  { %v710_v47 = vpop.f32.mrf.mxu0 }
  0xc3   :  { %v711_v48 = vadd.f32 %v3213_v15, %v710_v47 }
  0xc5   :  { %2829 = vmatmul.msk.bf16.gmra.mxu0 %vm488_vm0, %v3005_v46  ;;  %v1018_v51 = vmax.f32 %v711_v48, 0.0  ;;  %v3011_v48 = vld [vmem:[%s4173_s0 + $0x90] sm:$0xff] }
  0xca   :  { %v712_v49 = vpop.f32.mrf.mxu0 }
  0xcb   :  { %v713_v50 = vadd.f32 %v3213_v15, %v712_v49 }
  0xcd   :  { %v1019_v52 = vmax.f32 %v713_v50, 0.0 }
  0xcf   :  { %v1142_v53 = vpack.c.bf16 %v1019_v52, %v1018_v51 }
  0xd1   :  { %2901 = vmatmul.msk.bf16.gmra.mxu1 %vm1238_vm1, %v1142_v53 }
  0xd2   :  { %v715_v55 = vpop.f32.mrf.mxu0 }
  0xd3   :  { %v716_v56 = vadd.f32 %v3213_v15, %v715_v55 }
  0xd5   :  { %2830 = vmatmul.msk.bf16.gmra.mxu0 %vm488_vm0, %v3006_v54  ;;  %v1020_v60 = vmax.f32 %v716_v56, 0.0 }
  0xda   :  { %v717_v57 = vpop.f32.mrf.mxu0 }
  0xdb   :  { %v718_v58 = vadd.f32 %v3213_v15, %v717_v57 }
  0xdd   :  { %v1021_v61 = vmax.f32 %v718_v58, 0.0 }
  0xdf   :  { %v1143_v62 = vpack.c.bf16 %v1021_v61, %v1020_v60 }
  0xe1   :  { %2902 = vmatmul.msk.bf16.gmra.mxu1 %vm1238_vm1, %v1143_v62 }
  0xe2   :  { %v720_v1 = vpop.f32.mrf.mxu0 }
  0xe3   :  { %v721_v4 = vadd.f32 %v3213_v15, %v720_v1  ;;  %v3012_v1 = vld [vmem:[%s4173_s0 + $0x98] sm:$0xff] }
  0xe5   :  { %2831 = vmatmul.msk.bf16.gmra.mxu0 %vm488_vm0, %v3007_v0  ;;  %v1022_v8 = vmax.f32 %v721_v4, 0.0 }
  0xea   :  { %v722_v5 = vpop.f32.mrf.mxu0 }
  0xeb   :  { %v723_v6 = vadd.f32 %v3213_v15, %v722_v5 }
  0xed   :  { %v1023_v9 = vmax.f32 %v723_v6, 0.0 }
  0xef   :  { %v1144_v10 = vpack.c.bf16 %v1023_v9, %v1022_v8 }
  0xf1   :  { %2903 = vmatmul.msk.bf16.gmra.mxu1 %vm1238_vm1, %v1144_v10 }
  0xf2   :  { %v725_v13 = vpop.f32.mrf.mxu0 }
  0xf3   :  { %v726_v17 = vadd.f32 %v3213_v15, %v725_v13 }
  0xf5   :  { %2832 = vmatmul.msk.bf16.gmra.mxu0 %vm488_vm0, %v3008_v12  ;;  %v1024_v20 = vmax.f32 %v726_v17, 0.0 }
  0xfa   :  { %v727_v18 = vpop.f32.mrf.mxu0 }
  0xfb   :  { %v728_v19 = vadd.f32 %v3213_v15, %v727_v18 }
  0xfd   :  { %v1025_v21 = vmax.f32 %v728_v19, 0.0 }
  0xff   :  { %v1145_v22 = vpack.c.bf16 %v1025_v21, %v1024_v20 }
 0x101   :  { %2904 = vmatmul.msk.bf16.gmra.mxu1 %vm1238_vm1, %v1145_v22 }
 0x102   :  { %v730_v24 = vpop.f32.mrf.mxu0 }
 0x103   :  { %v731_v25 = vadd.f32 %v3213_v15, %v730_v24 }
 0x105   :  { %2833 = vmatmul.msk.bf16.gmra.mxu0 %vm488_vm0, %v3009_v23  ;;  %v1026_v28 = vmax.f32 %v731_v25, 0.0  ;;  %v3013_v23 = vld [vmem:[%s4173_s0 + $0xa0] sm:$0xff] }
 0x10a   :  { %v732_v26 = vpop.f32.mrf.mxu0 }
 0x10b   :  { %v733_v27 = vadd.f32 %v3213_v15, %v732_v26 }
 0x10d   :  { %v1027_v29 = vmax.f32 %v733_v27, 0.0 }
 0x10e   :  { %v1440_v30 = vpop.f32.mrf.mxu1 }
 0x10f   :  { %v1146_v31 = vpack.c.bf16 %v1027_v29, %v1026_v28  ;;  %v1441_v35 = vadd.f32 %v3325_v32, %v1440_v30 }
 0x111   :  { %2905 = vmatmul.msk.bf16.gmra.mxu1 %vm1238_vm1, %v1146_v31  ;;  %v1760_v38 = vmax.f32 %v1441_v35, 0.0 }
 0x112   :  { %v735_v34 = vpop.f32.mrf.mxu0 }
 0x113   :  { %v736_v39 = vadd.f32 %v3213_v15, %v735_v34 }
 0x115   :  { %2834 = vmatmul.msk.bf16.gmra.mxu0 %vm488_vm0, %v3010_v33  ;;  %v1028_v44 = vmax.f32 %v736_v39, 0.0  ;;  %v3014_v39 = vld [vmem:[%s4173_s0 + $0xa8] sm:$0xff] }
 0x116   :  { %v1442_v36 = vpop.f32.mrf.mxu1 }
 0x117   :  { %v1443_v37 = vadd.f32 %v3325_v32, %v1442_v36 }
 0x119   :  { %v1761_v40 = vmax.f32 %v1443_v37, 0.0 }
 0x11a   :  { %v737_v41 = vpop.f32.mrf.mxu0 }
 0x11b   :  { %v738_v42 = vadd.f32 %v3213_v15, %v737_v41  ;;  %v1888_v43 = vpack.c.bf16 %v1761_v40, %v1760_v38 }
 0x11d   :  { %v1029_v45 = vmax.f32 %v738_v42, 0.0  ;;  %2028 = vmatmul.bf16.vlgmr.msra.gmra.mxu2 %v1888_v43 }
 0x11e   :  { %v1445_v46 = vpop.f32.mrf.mxu1 }
 0x11f   :  { %v1147_v47 = vpack.c.bf16 %v1029_v45, %v1028_v44  ;;  %v1446_v50 = vadd.f32 %v3325_v32, %v1445_v46 }
 0x121   :  { %2906 = vmatmul.msk.bf16.gmra.mxu1 %vm1238_vm1, %v1147_v47  ;;  %v1762_v53 = vmax.f32 %v1446_v50, 0.0 }
 0x122   :  { %v740_v49 = vpop.f32.mrf.mxu0 }
 0x123   :  { %v741_v54 = vadd.f32 %v3213_v15, %v740_v49 }
 0x125   :  { %2835 = vmatmul.msk.bf16.gmra.mxu0 %vm488_vm0, %v3011_v48  ;;  %v1030_v60 = vmax.f32 %v741_v54, 0.0  ;;  %v3015_v54 = vld [vmem:[%s4173_s0 + $0xb0] sm:$0xff] }
 0x126   :  { %v1447_v51 = vpop.f32.mrf.mxu1 }
 0x127   :  { %v1448_v52 = vadd.f32 %v3325_v32, %v1447_v51 }
 0x129   :  { %v1763_v55 = vmax.f32 %v1448_v52, 0.0 }
 0x12a   :  { %v742_v56 = vpop.f32.mrf.mxu0 }
 0x12b   :  { %v743_v57 = vadd.f32 %v3213_v15, %v742_v56  ;;  %v1889_v58 = vpack.c.bf16 %v1763_v55, %v1762_v53 }
 0x12d   :  { %v1031_v61 = vmax.f32 %v743_v57, 0.0  ;;  %2033 = vmatmul.bf16.gmra.mxu2 %v1889_v58 }
 0x12e   :  { %v1450_v62 = vpop.f32.mrf.mxu1 }
 0x12f   :  { %v1148_v0 = vpack.c.bf16 %v1031_v61, %v1030_v60  ;;  %v1451_v5 = vadd.f32 %v3325_v32, %v1450_v62 }
 0x131   :  { %2907 = vmatmul.msk.bf16.gmra.mxu1 %vm1238_vm1, %v1148_v0  ;;  %v1764_v9 = vmax.f32 %v1451_v5, 0.0 }
 0x132   :  { %v745_v4 = vpop.f32.mrf.mxu0 }
 0x133   :  { %v746_v10 = vadd.f32 %v3213_v15, %v745_v4 }
 0x135   :  { %2836 = vmatmul.msk.bf16.gmra.mxu0 %vm488_vm0, %v3012_v1  ;;  %v1032_v19 = vmax.f32 %v746_v10, 0.0  ;;  %v3016_v10 = vld [vmem:[%s4173_s0 + $0xb8] sm:$0xff] }
 0x136   :  { %v1452_v6 = vpop.f32.mrf.mxu1 }
 0x137   :  { %v1453_v8 = vadd.f32 %v3325_v32, %v1452_v6 }
 0x139   :  { %v1765_v12 = vmax.f32 %v1453_v8, 0.0 }
 0x13a   :  { %v747_v13 = vpop.f32.mrf.mxu0 }
 0x13b   :  { %v748_v17 = vadd.f32 %v3213_v15, %v747_v13  ;;  %v1890_v18 = vpack.c.bf16 %v1765_v12, %v1764_v9 }
 0x13d   :  { %v1033_v20 = vmax.f32 %v748_v17, 0.0  ;;  %2038 = vmatmul.bf16.gmra.mxu2 %v1890_v18 }
 0x13e   :  { %v1455_v21 = vpop.f32.mrf.mxu1 }
 0x13f   :  { %v1149_v22 = vpack.c.bf16 %v1033_v20, %v1032_v19  ;;  %v1456_v25 = vadd.f32 %v3325_v32, %v1455_v21 }
 0x141   :  { %2908 = vmatmul.msk.bf16.gmra.mxu1 %vm1238_vm1, %v1149_v22  ;;  %v1766_v28 = vmax.f32 %v1456_v25, 0.0 }
 0x142   :  { %v750_v24 = vpop.f32.mrf.mxu0 }
 0x143   :  { %v751_v29 = vadd.f32 %v3213_v15, %v750_v24 }
 0x145   :  { %2837 = vmatmul.msk.bf16.gmra.mxu0 %vm488_vm0, %v3013_v23  ;;  %v1034_v35 = vmax.f32 %v751_v29, 0.0  ;;  %v3017_v29 = vld [vmem:[%s4173_s0 + $0xc0] sm:$0xff] }
 0x146   :  { %v1457_v26 = vpop.f32.mrf.mxu1 }
 0x147   :  { %v1458_v27 = vadd.f32 %v3325_v32, %v1457_v26 }
 0x149   :  { %v1767_v30 = vmax.f32 %v1458_v27, 0.0 }
 0x14a   :  { %v752_v31 = vpop.f32.mrf.mxu0 }
 0x14b   :  { %v753_v33 = vadd.f32 %v3213_v15, %v752_v31  ;;  %v1891_v34 = vpack.c.bf16 %v1767_v30, %v1766_v28 }
 0x14d   :  { %v1035_v36 = vmax.f32 %v753_v33, 0.0  ;;  %2043 = vmatmul.bf16.gmra.mxu2 %v1891_v34 }
 0x14e   :  { %v1460_v37 = vpop.f32.mrf.mxu1 }
 0x14f   :  { %v1150_v38 = vpack.c.bf16 %v1035_v36, %v1034_v35  ;;  %v1461_v41 = vadd.f32 %v3325_v32, %v1460_v37 }
 0x151   :  { %2909 = vmatmul.msk.bf16.gmra.mxu1 %vm1238_vm1, %v1150_v38  ;;  %v1768_v44 = vmax.f32 %v1461_v41, 0.0 }
 0x152   :  { %v755_v40 = vpop.f32.mrf.mxu0 }
 0x153   :  { %v756_v45 = vadd.f32 %v3213_v15, %v755_v40 }
 0x155   :  { %2838 = vmatmul.msk.bf16.gmra.mxu0 %vm488_vm0, %v3014_v39  ;;  %v1036_v50 = vmax.f32 %v756_v45, 0.0  ;;  %v3018_v45 = vld [vmem:[%s4173_s0 + $0xc8] sm:$0xff] }
 0x156   :  { %v1462_v42 = vpop.f32.mrf.mxu1 }
 0x157   :  { %v1463_v43 = vadd.f32 %v3325_v32, %v1462_v42 }
 0x159   :  { %v1769_v46 = vmax.f32 %v1463_v43, 0.0 }
 0x15a   :  { %v757_v47 = vpop.f32.mrf.mxu0 }
 0x15b   :  { %v758_v48 = vadd.f32 %v3213_v15, %v757_v47  ;;  %v1892_v49 = vpack.c.bf16 %v1769_v46, %v1768_v44 }
 0x15d   :  { %v1037_v51 = vmax.f32 %v758_v48, 0.0  ;;  %2048 = vmatmul.bf16.gmra.mxu2 %v1892_v49 }
 0x15e   :  { %v1465_v52 = vpop.f32.mrf.mxu1 }
 0x15f   :  { %v1151_v53 = vpack.c.bf16 %v1037_v51, %v1036_v50  ;;  %v1466_v56 = vadd.f32 %v3325_v32, %v1465_v52 }
 0x161   :  { %2910 = vmatmul.msk.bf16.gmra.mxu1 %vm1238_vm1, %v1151_v53  ;;  %v1770_v60 = vmax.f32 %v1466_v56, 0.0 }
 0x162   :  { %v760_v55 = vpop.f32.mrf.mxu0 }
 0x163   :  { %v761_v61 = vadd.f32 %v3213_v15, %v760_v55 }
 0x165   :  { %2839 = vmatmul.msk.bf16.gmra.mxu0 %vm488_vm0, %v3015_v54  ;;  %v1038_v5 = vmax.f32 %v761_v61, 0.0 }
 0x166   :  { %v1467_v57 = vpop.f32.mrf.mxu1 }
 0x167   :  { %v1468_v58 = vadd.f32 %v3325_v32, %v1467_v57 }
 0x169   :  { %v1771_v62 = vmax.f32 %v1468_v58, 0.0 }
 0x16a   :  { %v762_v0 = vpop.f32.mrf.mxu0 }
 0x16b   :  { %v763_v1 = vadd.f32 %v3213_v15, %v762_v0  ;;  %v1893_v4 = vpack.c.bf16 %v1771_v62, %v1770_v60  ;;  %v3019_v62 = vld [vmem:[%s4173_s0 + $0xd0] sm:$0xff] }
 0x16d   :  { %v1039_v6 = vmax.f32 %v763_v1, 0.0  ;;  %2053 = vmatmul.bf16.gmra.mxu2 %v1893_v4  ;;  %v3416_v4 = vld [vmem:[%s4179_s6] ss:$0 sm:$0xff] }
 0x16e   :  { %v1470_v8 = vpop.f32.mrf.mxu1 }
 0x16f   :  { %v1152_v9 = vpack.c.bf16 %v1039_v6, %v1038_v5  ;;  %v1471_v13 = vadd.f32 %v3325_v32, %v1470_v8 }
 0x171   :  { %2911 = vmatmul.msk.bf16.gmra.mxu1 %vm1238_vm1, %v1152_v9  ;;  %v1772_v19 = vmax.f32 %v1471_v13, 0.0 }
 0x172   :  { %v765_v12 = vpop.f32.mrf.mxu0 }
 0x173   :  { %v766_v20 = vadd.f32 %v3213_v15, %v765_v12 }
 0x175   :  { %2840 = vmatmul.msk.bf16.gmra.mxu0 %vm488_vm0, %v3016_v10  ;;  %v1040_v25 = vmax.f32 %v766_v20, 0.0 }
 0x176   :  { %v1472_v17 = vpop.f32.mrf.mxu1 }
 0x177   :  { %v1473_v18 = vadd.f32 %v3325_v32, %v1472_v17 }
 0x179   :  { %v1773_v21 = vmax.f32 %v1473_v18, 0.0 }
 0x17a   :  { %v767_v22 = vpop.f32.mrf.mxu0 }
 0x17b   :  { %v768_v23 = vadd.f32 %v3213_v15, %v767_v22  ;;  %v1894_v24 = vpack.c.bf16 %v1773_v21, %v1772_v19 }
 0x17d   :  { %v1041_v26 = vmax.f32 %v768_v23, 0.0  ;;  %2058 = vmatmul.bf16.gmra.mxu2 %v1894_v24  ;;  %v3042_v24 = vld [vmem:[%s4173_s0 + $0x188] sm:$0xff] }
 0x17e   :  { %v1475_v27 = vpop.f32.mrf.mxu1  ;;  %2866 = vmatmul.msk.bf16.vlgmr.msra.gmra.mxu3 %vm488_vm0, %v3042_v24 }
 0x17f   :  { %v1153_v28 = vpack.c.bf16 %v1041_v26, %v1040_v25  ;;  %v1476_v31 = vadd.f32 %v3325_v32, %v1475_v27  ;;  %3075 = vmatpush.bf16.msra.mxu3 %v3256_v59 }
 0x181   :  { %2912 = vmatmul.msk.bf16.gmra.mxu1 %vm1238_vm1, %v1153_v28  ;;  %v1774_v35 = vmax.f32 %v1476_v31, 0.0 }
 0x182   :  { %v770_v30 = vpop.f32.mrf.mxu0 }
 0x183   :  { %v771_v36 = vadd.f32 %v3213_v15, %v770_v30  ;;  %3076 = vmatpush.bf16.msra.mxu3 %v3262_v63 }
 0x185   :  { %2841 = vmatmul.msk.bf16.gmra.mxu0 %vm488_vm0, %v3017_v29  ;;  %v1042_v41 = vmax.f32 %v771_v36, 0.0  ;;  %v3020_v29 = vld [vmem:[%s4173_s0 + $0xd8] sm:$0xff] }
 0x186   :  { %v1477_v33 = vpop.f32.mrf.mxu1 }
 0x187   :  { %v1478_v34 = vadd.f32 %v3325_v32, %v1477_v33  ;;  %3077 = vmatpush.bf16.msra.mxu3 %v3272_v2  ;;  %v3043_v2 = vld [vmem:[%s4173_s0 + $0x190] sm:$0xff] }
 0x189   :  { %v1775_v37 = vmax.f32 %v1478_v34, 0.0 }
 0x18a   :  { %v772_v38 = vpop.f32.mrf.mxu0 }
 0x18b   :  { %v773_v39 = vadd.f32 %v3213_v15, %v772_v38  ;;  %v1895_v40 = vpack.c.bf16 %v1775_v37, %v1774_v35  ;;  %3078 = vmatpush.bf16.msra.mxu3 %v3279_v3  ;;  %v3021_v3 = vld [vmem:[%s4173_s0 + $0xe0] sm:$0xff] }
 0x18d   :  { %v1043_v42 = vmax.f32 %v773_v39, 0.0  ;;  %2063 = vmatmul.bf16.gmra.mxu2 %v1895_v40 }
 0x18e   :  { %v1480_v43 = vpop.f32.mrf.mxu1  ;;  %2867 = vmatmul.msk.bf16.gmra.mxu3 %vm488_vm0, %v3043_v2 }
 0x18f   :  { %v1154_v44 = vpack.c.bf16 %v1043_v42, %v1042_v41  ;;  %v1481_v47 = vadd.f32 %v3325_v32, %v1480_v43  ;;  %3079 = vmatpush.bf16.msra.mxu3 %v3287_v7 }
 0x191   :  { %2913 = vmatmul.msk.bf16.gmra.mxu1 %vm1238_vm1, %v1154_v44  ;;  %v1776_v50 = vmax.f32 %v1481_v47, 0.0 }
 0x192   :  { %v775_v46 = vpop.f32.mrf.mxu0 }
 0x193   :  { %v776_v51 = vadd.f32 %v3213_v15, %v775_v46  ;;  %3080 = vmatpush.bf16.msra.mxu3 %v3293_v11 }
 0x195   :  { %2842 = vmatmul.msk.bf16.gmra.mxu0 %vm488_vm0, %v3018_v45  ;;  %v1044_v56 = vmax.f32 %v776_v51, 0.0 }
 0x196   :  { %v1482_v48 = vpop.f32.mrf.mxu1 }
 0x197   :  { %v1483_v49 = vadd.f32 %v3325_v32, %v1482_v48  ;;  %3081 = vmatpush.bf16.msra.mxu3 %v3303_v14  ;;  %v3044_v14 = vld [vmem:[%s4173_s0 + $0x198] sm:$0xff] }
 0x199   :  { %v1777_v52 = vmax.f32 %v1483_v49, 0.0 }
 0x19a   :  { %v777_v53 = vpop.f32.mrf.mxu0 }
 0x19b   :  { %v778_v54 = vadd.f32 %v3213_v15, %v777_v53  ;;  %v1896_v55 = vpack.c.bf16 %v1777_v52, %v1776_v50  ;;  %3082 = vmatpush.bf16.msra.mxu3 %v3310_v16  ;;  %v3022_v16 = vld [vmem:[%s4173_s0 + $0xe8] sm:$0xff] }
 0x19d   :  { %v1045_v57 = vmax.f32 %v778_v54, 0.0  ;;  %2068 = vmatmul.bf16.gmra.mxu2 %v1896_v55 }
 0x19e   :  { %v1485_v58 = vpop.f32.mrf.mxu1  ;;  %2868 = vmatmul.msk.bf16.gmra.mxu3 %vm488_vm0, %v3044_v14 }
 0x19f   :  { %v1155_v60 = vpack.c.bf16 %v1045_v57, %v1044_v56  ;;  %v1486_v1 = vadd.f32 %v3325_v32, %v1485_v58 }
 0x1a0   :  { %v2029_v61 = vpop.f32.mrf.mxu2 }
 0x1a1   :  { %2914 = vmatmul.msk.bf16.gmra.mxu1 %vm1238_vm1, %v1155_v60  ;;  %v1778_v8 = vmax.f32 %v1486_v1, 0.0  ;;  %v2030_v10 = vadd.f32 %v3416_v4, %v2029_v61 }
 0x1a2   :  { %v780_v0 = vpop.f32.mrf.mxu0 }
 0x1a3   :  { %v781_v12 = vadd.f32 %v3213_v15, %v780_v0 }
 0x1a5   :  { %2843 = vmatmul.msk.bf16.gmra.mxu0 %vm488_vm0, %v3019_v62  ;;  %v1046_v22 = vmax.f32 %v781_v12, 0.0 }
 0x1a6   :  { %v1487_v5 = vpop.f32.mrf.mxu1 }
 0x1a7   :  { %v1488_v6 = vadd.f32 %v3325_v32, %v1487_v5 }
 0x1a8   :  { %v2031_v9 = vpop.f32.mrf.mxu2 }
 0x1a9   :  { %v1779_v13 = vmax.f32 %v1488_v6, 0.0  ;;  %v2032_v17 = vadd.f32 %v3416_v4, %v2031_v9 }
 0x1aa   :  { %v782_v18 = vpop.f32.mrf.mxu0 }
 0x1ab   :  { %v2349_v19 = vmax.f32 %v2030_v10, %v2032_v17  ;;  %v783_v20 = vadd.f32 %v3213_v15, %v782_v18  ;;  %v1897_v21 = vpack.c.bf16 %v1779_v13, %v1778_v8 }
 0x1ad   :  { %v1047_v23 = vmax.f32 %v783_v20, 0.0  ;;  %2073 = vmatmul.bf16.gmra.mxu2 %v1897_v21 }
 0x1ae   :  { %v1490_v25 = vpop.f32.mrf.mxu1 }
 0x1af   :  { %v1156_v26 = vpack.c.bf16 %v1047_v23, %v1046_v22  ;;  %v1491_v33 = vadd.f32 %v3325_v32, %v1490_v25 }
 0x1b0   :  { %v2034_v27 = vpop.f32.mrf.mxu2 }
 0x1b1   :  { %v2035_v28 = vadd.f32 %v3416_v4, %v2034_v27  ;;  %2915 = vmatmul.msk.bf16.gmra.mxu1 %vm1238_vm1, %v1156_v26  ;;  %v1780_v36 = vmax.f32 %v1491_v33, 0.0 }
 0x1b2   :  { %v785_v30 = vpop.f32.mrf.mxu0 }
 0x1b3   :  { %v2350_v31 = vmax.f32 %v2349_v19, %v2035_v28  ;;  %v786_v37 = vadd.f32 %v3213_v15, %v785_v30 }
 0x1b5   :  { %2844 = vmatmul.msk.bf16.gmra.mxu0 %vm488_vm0, %v3020_v29  ;;  %v1048_v43 = vmax.f32 %v786_v37, 0.0  ;;  %v3045_v29 = vld [vmem:[%s4173_s0 + $0x1a0] sm:$0xff] }
 0x1b6   :  { %v1492_v34 = vpop.f32.mrf.mxu1  ;;  %2869 = vmatmul.msk.bf16.gmra.mxu3 %vm488_vm0, %v3045_v29 }
 0x1b7   :  { %v1493_v35 = vadd.f32 %v3325_v32, %v1492_v34 }
 0x1b8   :  { %v2036_v59 = vpop.f32.mrf.mxu2 }
 0x1b9   :  { %v1781_v38 = vmax.f32 %v1493_v35, 0.0  ;;  %v2037_v39 = vadd.f32 %v3416_v4, %v2036_v59  ;;  %v3023_v35 = vld [vmem:[%s4173_s0 + $0xf0] sm:$0xff] }
 0x1ba   :  { %v787_v40 = vpop.f32.mrf.mxu0 }
 0x1bb   :  { %v2351_v41 = vmax.f32 %v2350_v31, %v2037_v39  ;;  %v788_v63 = vadd.f32 %v3213_v15, %v787_v40  ;;  %v1898_v42 = vpack.c.bf16 %v1781_v38, %v1780_v36 }
 0x1bd   :  { %v1049_v44 = vmax.f32 %v788_v63, 0.0  ;;  %2078 = vmatmul.bf16.gmra.mxu2 %v1898_v42 }
 0x1be   :  { %v1495_v45 = vpop.f32.mrf.mxu1 }
 0x1bf   :  { %v1157_v46 = vpack.c.bf16 %v1049_v44, %v1048_v43  ;;  %v1496_v51 = vadd.f32 %v3325_v32, %v1495_v45 }
 0x1c0   :  { %v2039_v47 = vpop.f32.mrf.mxu2 }
 0x1c1   :  { %v2040_v48 = vadd.f32 %v3416_v4, %v2039_v47  ;;  %2916 = vmatmul.msk.bf16.gmra.mxu1 %vm1238_vm1, %v1157_v46  ;;  %v1782_v54 = vmax.f32 %v1496_v51, 0.0 }
 0x1c2   :  { %v790_v49 = vpop.f32.mrf.mxu0 }
 0x1c3   :  { %v2352_v50 = vmax.f32 %v2351_v41, %v2040_v48  ;;  %v791_v55 = vadd.f32 %v3213_v15, %v790_v49 }
 0x1c5   :  { %2845 = vmatmul.msk.bf16.gmra.mxu0 %vm488_vm0, %v3021_v3  ;;  %v1050_v62 = vmax.f32 %v791_v55, 0.0  ;;  %v3046_v3 = vld [vmem:[%s4173_s0 + $0x1a8] sm:$0xff] }
 0x1c6   :  { %v1497_v52 = vpop.f32.mrf.mxu1  ;;  %2870 = vmatmul.msk.bf16.gmra.mxu3 %vm488_vm0, %v3046_v3 }
 0x1c7   :  { %v1498_v53 = vadd.f32 %v3325_v32, %v1497_v52 }
 0x1c8   :  { %v2041_v7 = vpop.f32.mrf.mxu2 }
 0x1c9   :  { %v1783_v56 = vmax.f32 %v1498_v53, 0.0  ;;  %v2042_v57 = vadd.f32 %v3416_v4, %v2041_v7  ;;  %v3024_v53 = vld [vmem:[%s4173_s0 + $0xf8] sm:$0xff] }
 0x1ca   :  { %v792_v58 = vpop.f32.mrf.mxu0 }
 0x1cb   :  { %v2353_v60 = vmax.f32 %v2352_v50, %v2042_v57  ;;  %v793_v11 = vadd.f32 %v3213_v15, %v792_v58  ;;  %v1899_v61 = vpack.c.bf16 %v1783_v56, %v1782_v54 }
 0x1cd   :  { %v1051_v0 = vmax.f32 %v793_v11, 0.0  ;;  %2083 = vmatmul.bf16.gmra.mxu2 %v1899_v61 }
 0x1ce   :  { %v1500_v1 = vpop.f32.mrf.mxu1 }
 0x1cf   :  { %v1158_v5 = vpack.c.bf16 %v1051_v0, %v1050_v62  ;;  %v1501_v12 = vadd.f32 %v3325_v32, %v1500_v1 }
 0x1d0   :  { %v2044_v6 = vpop.f32.mrf.mxu2 }
 0x1d1   :  { %v2045_v8 = vadd.f32 %v3416_v4, %v2044_v6  ;;  %2917 = vmatmul.msk.bf16.gmra.mxu1 %vm1238_vm1, %v1158_v5  ;;  %v1784_v19 = vmax.f32 %v1501_v12, 0.0 }
 0x1d2   :  { %v795_v9 = vpop.f32.mrf.mxu0 }
 0x1d3   :  { %v2354_v10 = vmax.f32 %v2353_v60, %v2045_v8  ;;  %v796_v20 = vadd.f32 %v3213_v15, %v795_v9 }
 0x1d5   :  { %2846 = vmatmul.msk.bf16.gmra.mxu0 %vm488_vm0, %v3022_v16  ;;  %v1052_v27 = vmax.f32 %v796_v20, 0.0  ;;  %v3047_v16 = vld [vmem:[%s4173_s0 + $0x1b0] sm:$0xff] }
 0x1d6   :  { %v1502_v13 = vpop.f32.mrf.mxu1  ;;  %2871 = vmatmul.msk.bf16.gmra.mxu3 %vm488_vm0, %v3047_v16 }
 0x1d7   :  { %v1503_v17 = vadd.f32 %v3325_v32, %v1502_v13 }
 0x1d8   :  { %v2046_v18 = vpop.f32.mrf.mxu2 }
 0x1d9   :  { %v1785_v21 = vmax.f32 %v1503_v17, 0.0  ;;  %v2047_v22 = vadd.f32 %v3416_v4, %v2046_v18  ;;  %v3025_v17 = vld [vmem:[%s4173_s0 + $0x100] sm:$0xff] }
 0x1da   :  { %v797_v23 = vpop.f32.mrf.mxu0 }
 0x1db   :  { %v2355_v24 = vmax.f32 %v2354_v10, %v2047_v22  ;;  %v798_v25 = vadd.f32 %v3213_v15, %v797_v23  ;;  %v1900_v26 = vpack.c.bf16 %v1785_v21, %v1784_v19 }
 0x1dd   :  { %v1053_v28 = vmax.f32 %v798_v25, 0.0  ;;  %2088 = vmatmul.bf16.gmra.mxu2 %v1900_v26 }
 0x1de   :  { %v1505_v30 = vpop.f32.mrf.mxu1 }
 0x1df   :  { %v1159_v31 = vpack.c.bf16 %v1053_v28, %v1052_v27  ;;  %v1506_v37 = vadd.f32 %v3325_v32, %v1505_v30 }
 0x1e0   :  { %v2049_v33 = vpop.f32.mrf.mxu2 }
 0x1e1   :  { %v2050_v34 = vadd.f32 %v3416_v4, %v2049_v33  ;;  %2918 = vmatmul.msk.bf16.gmra.mxu1 %vm1238_vm1, %v1159_v31  ;;  %v1786_v41 = vmax.f32 %v1506_v37, 0.0 }
 0x1e2   :  { %v800_v59 = vpop.f32.mrf.mxu0 }
 0x1e3   :  { %v2356_v36 = vmax.f32 %v2355_v24, %v2050_v34  ;;  %v801_v63 = vadd.f32 %v3213_v15, %v800_v59 }
 0x1e5   :  { %2847 = vmatmul.msk.bf16.gmra.mxu0 %vm488_vm0, %v3023_v35  ;;  %v1054_v47 = vmax.f32 %v801_v63, 0.0  ;;  %v3048_v35 = vld [vmem:[%s4173_s0 + $0x1b8] sm:$0xff] }
 0x1e6   :  { %v1507_v38 = vpop.f32.mrf.mxu1  ;;  %2872 = vmatmul.msk.bf16.gmra.mxu3 %vm488_vm0, %v3048_v35 }
 0x1e7   :  { %v1508_v39 = vadd.f32 %v3325_v32, %v1507_v38 }
 0x1e8   :  { %v2051_v40 = vpop.f32.mrf.mxu2 }
 0x1e9   :  { %v1787_v42 = vmax.f32 %v1508_v39, 0.0  ;;  %v2052_v43 = vadd.f32 %v3416_v4, %v2051_v40  ;;  %v3026_v39 = vld [vmem:[%s4173_s0 + $0x108] sm:$0xff] }
 0x1ea   :  { %v802_v44 = vpop.f32.mrf.mxu0 }
 0x1eb   :  { %v2357_v2 = vmax.f32 %v2356_v36, %v2052_v43  ;;  %v803_v45 = vadd.f32 %v3213_v15, %v802_v44  ;;  %v1901_v46 = vpack.c.bf16 %v1787_v42, %v1786_v41 }
 0x1ed   :  { %v1055_v48 = vmax.f32 %v803_v45, 0.0  ;;  %2093 = vmatmul.bf16.gmra.mxu2 %v1901_v46 }
 0x1ee   :  { %v1510_v49 = vpop.f32.mrf.mxu1 }
 0x1ef   :  { %v1160_v50 = vpack.c.bf16 %v1055_v48, %v1054_v47  ;;  %v1511_v55 = vadd.f32 %v3325_v32, %v1510_v49 }
 0x1f0   :  { %v2054_v51 = vpop.f32.mrf.mxu2 }
 0x1f1   :  { %v2055_v52 = vadd.f32 %v3416_v4, %v2054_v51  ;;  %2919 = vmatmul.msk.bf16.gmra.mxu1 %vm1238_vm1, %v1160_v50  ;;  %v1788_v60 = vmax.f32 %v1511_v55, 0.0 }
 0x1f2   :  { %v805_v7 = vpop.f32.mrf.mxu0 }
 0x1f3   :  { %v2358_v54 = vmax.f32 %v2357_v2, %v2055_v52  ;;  %v806_v11 = vadd.f32 %v3213_v15, %v805_v7 }
 0x1f5   :  { %2848 = vmatmul.msk.bf16.gmra.mxu0 %vm488_vm0, %v3024_v53  ;;  %v1056_v6 = vmax.f32 %v806_v11, 0.0  ;;  %v3049_v53 = vld [vmem:[%s4173_s0 + $0x1c0] sm:$0xff] }
 0x1f6   :  { %v1512_v56 = vpop.f32.mrf.mxu1  ;;  %2873 = vmatmul.msk.bf16.gmra.mxu3 %vm488_vm0, %v3049_v53 }
 0x1f7   :  { %v1513_v57 = vadd.f32 %v3325_v32, %v1512_v56  ;;  %v3027_v56 = vld [vmem:[%s4173_s0 + $0x110] sm:$0xff] }
 0x1f8   :  { %v2056_v58 = vpop.f32.mrf.mxu2 }
 0x1f9   :  { %v1789_v61 = vmax.f32 %v1513_v57, 0.0  ;;  %v2057_v62 = vadd.f32 %v3416_v4, %v2056_v58 }
 0x1fa   :  { %v807_v0 = vpop.f32.mrf.mxu0 }
 0x1fb   :  { %v2359_v14 = vmax.f32 %v2358_v54, %v2057_v62  ;;  %v808_v1 = vadd.f32 %v3213_v15, %v807_v0  ;;  %v1902_v5 = vpack.c.bf16 %v1789_v61, %v1788_v60 }
 0x1fd   :  { %v1057_v8 = vmax.f32 %v808_v1, 0.0  ;;  %2098 = vmatmul.bf16.gmra.mxu2 %v1902_v5 }
 0x1fe   :  { %v1515_v9 = vpop.f32.mrf.mxu1 }
 0x1ff   :  { %v1161_v10 = vpack.c.bf16 %v1057_v8, %v1056_v6  ;;  %v1516_v20 = vadd.f32 %v3325_v32, %v1515_v9 }
 0x200   :  { %v2059_v12 = vpop.f32.mrf.mxu2 }
 0x201   :  { %v2060_v13 = vadd.f32 %v3416_v4, %v2059_v12  ;;  %2920 = vmatmul.msk.bf16.gmra.mxu1 %vm1238_vm1, %v1161_v10  ;;  %v1790_v24 = vmax.f32 %v1516_v20, 0.0 }
 0x202   :  { %v810_v18 = vpop.f32.mrf.mxu0 }
 0x203   :  { %v2360_v19 = vmax.f32 %v2359_v14, %v2060_v13  ;;  %v811_v25 = vadd.f32 %v3213_v15, %v810_v18  ;;  %v3050_v13 = vld [vmem:[%s4173_s0 + $0x1c8] sm:$0xff] }
 0x205   :  { %2849 = vmatmul.msk.bf16.gmra.mxu0 %vm488_vm0, %v3025_v17  ;;  %v1058_v33 = vmax.f32 %v811_v25, 0.0 }
 0x206   :  { %v1517_v21 = vpop.f32.mrf.mxu1  ;;  %2874 = vmatmul.msk.bf16.gmra.mxu3 %vm488_vm0, %v3050_v13 }
 0x207   :  { %v1518_v22 = vadd.f32 %v3325_v32, %v1517_v21 }
 0x208   :  { %v2061_v23 = vpop.f32.mrf.mxu2 }
 0x209   :  { %v1791_v26 = vmax.f32 %v1518_v22, 0.0  ;;  %v2062_v27 = vadd.f32 %v3416_v4, %v2061_v23  ;;  %v3563_v22 = vpop.f32.mrf.mxu3 }
 0x20a   :  { %v812_v28 = vpop.f32.mrf.mxu0 }
 0x20b   :  { %v2361_v29 = vmax.f32 %v2360_v19, %v2062_v27  ;;  %v813_v30 = vadd.f32 %v3213_v15, %v812_v28  ;;  %v1903_v31 = vpack.c.bf16 %v1791_v26, %v1790_v24 }
 0x20d   :  { %v1059_v34 = vmax.f32 %v813_v30, 0.0  ;;  %2103 = vmatmul.bf16.gmra.mxu2 %v1903_v31 }
 0x20e   :  { %v1520_v59 = vpop.f32.mrf.mxu1 }
 0x20f   :  { %v1162_v36 = vpack.c.bf16 %v1059_v34, %v1058_v33  ;;  %v1521_v63 = vadd.f32 %v3325_v32, %v1520_v59 }
 0x210   :  { %v2064_v37 = vpop.f32.mrf.mxu2 }
 0x211   :  { %v2065_v38 = vadd.f32 %v3416_v4, %v2064_v37  ;;  %2921 = vmatmul.msk.bf16.gmra.mxu1 %vm1238_vm1, %v1162_v36  ;;  %v1792_v2 = vmax.f32 %v1521_v63, 0.0  ;;  %v3575_v35 = vpop.f32.mrf.mxu3 }
 0x212   :  { %v815_v40 = vpop.f32.mrf.mxu0 }
 0x213   :  { %v2362_v41 = vmax.f32 %v2361_v29, %v2065_v38  ;;  %v816_v45 = vadd.f32 %v3213_v15, %v815_v40  ;;  %v3571_v29 = vld [vmem:[%s4175_s2] ss:$0 sm:$0xff]  ;;  %v3051_v40 = vld [vmem:[%s4173_s0 + $0x1d0] sm:$0xff] }
 0x215   :  { %2850 = vmatmul.msk.bf16.gmra.mxu0 %vm488_vm0, %v3026_v39  ;;  %v1060_v51 = vmax.f32 %v816_v45, 0.0 }
 0x216   :  { %v1522_v42 = vpop.f32.mrf.mxu1  ;;  %2875 = vmatmul.msk.bf16.gmra.mxu3 %vm488_vm0, %v3051_v40 }
 0x217   :  { %v1523_v43 = vadd.f32 %v3325_v32, %v1522_v42 }
 0x218   :  { %v2066_v44 = vpop.f32.mrf.mxu2 }
 0x219   :  { %v1793_v46 = vmax.f32 %v1523_v43, 0.0  ;;  %v2067_v47 = vadd.f32 %v3416_v4, %v2066_v44  ;;  %v3029_v44 = vld [vmem:[%s4173_s0 + $0x120] sm:$0xff]  ;;  %v3587_v45 = vpop.f32.mrf.mxu3 }
 0x21a   :  { %v817_v48 = vpop.f32.mrf.mxu0 }
 0x21b   :  { %v3536_v3 = vmax.f32 %v2362_v41, %v2067_v47  ;;  %v818_v49 = vadd.f32 %v3213_v15, %v817_v48  ;;  %v1904_v50 = vpack.c.bf16 %v1793_v46, %v1792_v2 }
 0x21d   :  { %v1061_v52 = vmax.f32 %v818_v49, 0.0  ;;  %2108 = vmatmul.bf16.gmra.mxu2 %v1904_v50 }
 0x21e   :  { %v1525_v7 = vpop.f32.mrf.mxu1 }
 0x21f   :  { %v1163_v54 = vpack.c.bf16 %v1061_v52, %v1060_v51  ;;  %v1526_v58 = vadd.f32 %v3325_v32, %v1525_v7 }
 0x220   :  { %v2069_v55 = vpop.f32.mrf.mxu2 }
 0x221   :  { %2922 = vmatmul.msk.bf16.gmra.mxu1 %vm1238_vm1, %v1163_v54  ;;  %v1794_v61 = vmax.f32 %v1526_v58, 0.0  ;;  %v2070_v0 = vadd.f32 %v3416_v4, %v2069_v55  ;;  %v3594_v55 = vpop.f32.mrf.mxu3 }
 0x222   :  { %v820_v57 = vpop.f32.mrf.mxu0 }
 0x223   :  { %v821_v14 = vadd.f32 %v3213_v15, %v820_v57 }
 0x225   :  { %2851 = vmatmul.msk.bf16.gmra.mxu0 %vm488_vm0, %v3027_v56  ;;  %v1062_v10 = vmax.f32 %v821_v14, 0.0 }
 0x226   :  { %v1527_v60 = vpop.f32.mrf.mxu1 }
 0x227   :  { %v1528_v11 = vadd.f32 %v3325_v32, %v1527_v60 }
 0x228   :  { %v2071_v62 = vpop.f32.mrf.mxu2 }
 0x229   :  { %v1795_v1 = vmax.f32 %v1528_v11, 0.0  ;;  %v2072_v5 = vadd.f32 %v3416_v4, %v2071_v62 }
 0x22a   :  { %v822_v6 = vpop.f32.mrf.mxu0 }
 0x22b   :  { %v2370_v8 = vmax.f32 %v2070_v0, %v2072_v5  ;;  %v823_v16 = vadd.f32 %v3213_v15, %v822_v6  ;;  %v1905_v9 = vpack.c.bf16 %v1795_v1, %v1794_v61  ;;  %v3028_v15 = vld [vmem:[%s4173_s0 + $0x118] sm:$0xff]  ;;  %v3030_v5 = vld [vmem:[%s4173_s0 + $0x128] sm:$0xff] }
 0x22c   :  { %v3052_v61 = vld [vmem:[%s4173_s0 + $0x1d8] sm:$0xff] }
 0x22d   :  { %v1063_v12 = vmax.f32 %v823_v16, 0.0  ;;  %2113 = vmatmul.bf16.gmra.mxu2 %v1905_v9  ;;  %2876 = vmatmul.msk.bf16.gmra.mxu3 %vm488_vm0, %v3052_v61  ;;  %v3649_v61 = vld [vmem:[%s4177_s4] ss:$0 sm:$0xff] }
 0x22e   :  { %v1530_v17 = vpop.f32.mrf.mxu1 }
 0x22f   :  { %v1164_v18 = vpack.c.bf16 %v1063_v12, %v1062_v10  ;;  %v1531_v24 = vadd.f32 %v3325_v32, %v1530_v17 }
 0x230   :  { %v2074_v19 = vpop.f32.mrf.mxu2 }
 0x231   :  { %v2075_v20 = vadd.f32 %v3416_v4, %v2074_v19  ;;  %2923 = vmatmul.msk.bf16.gmra.mxu1 %vm1238_vm1, %v1164_v18  ;;  %v1796_v28 = vmax.f32 %v1531_v24, 0.0 }
 0x232   :  { %v825_v21 = vpop.f32.mrf.mxu0 }
 0x233   :  { %v2371_v23 = vmax.f32 %v2370_v8, %v2075_v20  ;;  %v826_v30 = vadd.f32 %v3571_v29, %v825_v21  ;;  %v3606_v8 = vpop.f32.mrf.mxu3 }
 0x235   :  { %2852 = vmatmul.msk.bf16.gmra.mxu0 %vm488_vm0, %v3028_v15  ;;  %v1064_v38 = vmax.f32 %v826_v30, 0.0 }
 0x236   :  { %v1532_v25 = vpop.f32.mrf.mxu1 }
 0x237   :  { %v1533_v26 = vadd.f32 %v3325_v32, %v1532_v25 }
 0x238   :  { %v2076_v27 = vpop.f32.mrf.mxu2 }
 0x239   :  { %v1797_v31 = vmax.f32 %v1533_v26, 0.0  ;;  %v2077_v33 = vadd.f32 %v3416_v4, %v2076_v27 }
 0x23a   :  { %v827_v34 = vpop.f32.mrf.mxu0 }
 0x23b   :  { %v2372_v59 = vmax.f32 %v2371_v23, %v2077_v33  ;;  %v828_v36 = vadd.f32 %v3571_v29, %v827_v34  ;;  %v1906_v37 = vpack.c.bf16 %v1797_v31, %v1796_v28  ;;  %v3613_v21 = vpop.f32.mrf.mxu3  ;;  %v3053_v28 = vld [vmem:[%s4173_s0 + $0x1e0] sm:$0xff] }
 0x23d   :  { %v1065_v39 = vmax.f32 %v828_v36, 0.0  ;;  %2118 = vmatmul.bf16.gmra.mxu2 %v1906_v37  ;;  %2877 = vmatmul.msk.bf16.gmra.mxu3 %vm488_vm0, %v3053_v28 }
 0x23e   :  { %v1535_v41 = vpop.f32.mrf.mxu1 }
 0x23f   :  { %v1165_v63 = vpack.c.bf16 %v1065_v39, %v1064_v38  ;;  %v1536_v47 = vadd.f32 %v3325_v32, %v1535_v41 }
 0x240   :  { %v2079_v42 = vpop.f32.mrf.mxu2 }
 0x241   :  { %v2080_v43 = vadd.f32 %v3416_v4, %v2079_v42  ;;  %2924 = vmatmul.msk.bf16.gmra.mxu1 %vm1238_vm1, %v1165_v63  ;;  %v1798_v51 = vmax.f32 %v1536_v47, 0.0 }
 0x242   :  { %v830_v2 = vpop.f32.mrf.mxu0 }
 0x243   :  { %v2373_v46 = vmax.f32 %v2372_v59, %v2080_v43  ;;  %v831_v52 = vadd.f32 %v3571_v29, %v830_v2  ;;  %v3031_v59 = vld [vmem:[%s4173_s0 + $0x130] sm:$0xff]  ;;  %v3625_v37 = vpop.f32.mrf.mxu3 }
 0x245   :  { %2853 = vmatmul.msk.bf16.gmra.mxu0 %vm488_vm0, %v3029_v44  ;;  %v1066_v60 = vmax.f32 %v831_v52, 0.0 }
 0x246   :  { %v1537_v48 = vpop.f32.mrf.mxu1 }
 0x247   :  { %v1538_v49 = vadd.f32 %v3325_v32, %v1537_v48 }
 0x248   :  { %v2081_v50 = vpop.f32.mrf.mxu2 }
 0x249   :  { %v1799_v53 = vmax.f32 %v1538_v49, 0.0  ;;  %v2082_v7 = vadd.f32 %v3416_v4, %v2081_v50 }
 0x24a   :  { %v832_v54 = vpop.f32.mrf.mxu0 }
 0x24b   :  { %v2374_v56 = vmax.f32 %v2373_v46, %v2082_v7  ;;  %v833_v57 = vadd.f32 %v3571_v29, %v832_v54  ;;  %v1907_v58 = vpack.c.bf16 %v1799_v53, %v1798_v51  ;;  %v3632_v47 = vpop.f32.mrf.mxu3 }
 0x24d   :  { %v1067_v11 = vmax.f32 %v833_v57, 0.0  ;;  %2123 = vmatmul.bf16.gmra.mxu2 %v1907_v58  ;;  %v3032_v57 = vld [vmem:[%s4173_s0 + $0x138] sm:$0xff] }
 0x24e   :  { %v1540_v62 = vpop.f32.mrf.mxu1 }
 0x24f   :  { %v1166_v0 = vpack.c.bf16 %v1067_v11, %v1066_v60  ;;  %v1541_v9 = vadd.f32 %v3325_v32, %v1540_v62 }
 0x250   :  { %v2084_v14 = vpop.f32.mrf.mxu2 }
 0x251   :  { %v2085_v1 = vadd.f32 %v3416_v4, %v2084_v14  ;;  %2925 = vmatmul.msk.bf16.gmra.mxu1 %vm1238_vm1, %v1166_v0  ;;  %v1800_v17 = vmax.f32 %v1541_v9, 0.0 }
 0x252   :  { %v835_v6 = vpop.f32.mrf.mxu0 }
 0x253   :  { %v2375_v16 = vmax.f32 %v2374_v56, %v2085_v1  ;;  %v836_v18 = vadd.f32 %v3571_v29, %v835_v6  ;;  %v3644_v60 = vpop.f32.mrf.mxu3 }
 0x255   :  { %2854 = vmatmul.msk.bf16.gmra.mxu0 %vm488_vm0, %v3030_v5  ;;  %v1068_v26 = vmax.f32 %v836_v18, 0.0 }
 0x256   :  { %v1542_v10 = vpop.f32.mrf.mxu1 }
 0x257   :  { %v1543_v12 = vadd.f32 %v3325_v32, %v1542_v10 }
 0x258   :  { %v2086_v13 = vpop.f32.mrf.mxu2 }
 0x259   :  { %v1801_v19 = vmax.f32 %v1543_v12, 0.0  ;;  %v2087_v20 = vadd.f32 %v3416_v4, %v2086_v13 }
 0x25a   :  { %v837_v15 = vpop.f32.mrf.mxu0 }
 0x25b   :  { %v2376_v23 = vmax.f32 %v2375_v16, %v2087_v20  ;;  %v838_v24 = vadd.f32 %v3571_v29, %v837_v15  ;;  %v1908_v25 = vpack.c.bf16 %v1801_v19, %v1800_v17  ;;  %v3656_v12 = vpop.f32.mrf.mxu3  ;;  %v3055_v15 = vld [vmem:[%s4173_s0 + $0x1f0] sm:$0xff] }
 0x25d   :  { %v1069_v27 = vmax.f32 %v838_v24, 0.0  ;;  %2128 = vmatmul.bf16.gmra.mxu2 %v1908_v25 }
 0x25e   :  { %v1545_v30 = vpop.f32.mrf.mxu1 }
 0x25f   :  { %v1167_v31 = vpack.c.bf16 %v1069_v27, %v1068_v26  ;;  %v1546_v39 = vadd.f32 %v3325_v32, %v1545_v30  ;;  %v3033_v27 = vld [vmem:[%s4173_s0 + $0x140] sm:$0xff] }
 0x260   :  { %v2089_v33 = vpop.f32.mrf.mxu2 }
 0x261   :  { %v2090_v34 = vadd.f32 %v3416_v4, %v2089_v33  ;;  %2926 = vmatmul.msk.bf16.gmra.mxu1 %vm1238_vm1, %v1167_v31  ;;  %v1802_v42 = vmax.f32 %v1546_v39, 0.0 }
 0x262   :  { %v840_v36 = vpop.f32.mrf.mxu0 }
 0x263   :  { %v2377_v38 = vmax.f32 %v2376_v23, %v2090_v34  ;;  %v841_v43 = vadd.f32 %v3571_v29, %v840_v36  ;;  %v3668_v30 = vpop.f32.mrf.mxu3 }
 0x265   :  { %2855 = vmatmul.msk.bf16.gmra.mxu0 %vm488_vm0, %v3031_v59  ;;  %v1070_v51 = vmax.f32 %v841_v43, 0.0 }
 0x266   :  { %v1547_v40 = vpop.f32.mrf.mxu1 }
 0x267   :  { %v1548_v41 = vadd.f32 %v3325_v32, %v1547_v40  ;;  %v3054_v32 = vld [vmem:[%s4173_s0 + $0x1e8] sm:$0xff] }
 0x268   :  { %v2091_v63 = vpop.f32.mrf.mxu2  ;;  %2878 = vmatmul.msk.bf16.gmra.mxu3 %vm488_vm0, %v3054_v32 }
 0x269   :  { %v1803_v44 = vmax.f32 %v1548_v41, 0.0  ;;  %v2092_v2 = vadd.f32 %v3416_v4, %v2091_v63 }
 0x26a   :  { %v842_v46 = vpop.f32.mrf.mxu0 }
 0x26b   :  { %v2378_v48 = vmax.f32 %v2377_v38, %v2092_v2  ;;  %v843_v49 = vadd.f32 %v3571_v29, %v842_v46  ;;  %v1909_v50 = vpack.c.bf16 %v1803_v44, %v1802_v42  ;;  %v3675_v42 = vpop.f32.mrf.mxu3 }
 0x26d   :  { %v1071_v52 = vmax.f32 %v843_v49, 0.0  ;;  %2133 = vmatmul.bf16.gmra.mxu2 %v1909_v50  ;;  %v3056_v49 = vld [vmem:[%s4173_s0 + $0x1f8] sm:$0xff] }
 0x26e   :  { %v1550_v53 = vpop.f32.mrf.mxu1 }
 0x26f   :  { %v1168_v7 = vpack.c.bf16 %v1071_v52, %v1070_v51  ;;  %v1551_v62 = vadd.f32 %v3649_v61, %v1550_v53  ;;  %v3034_v53 = vld [vmem:[%s4173_s0 + $0x148] sm:$0xff] }
 0x270   :  { %v2094_v54 = vpop.f32.mrf.mxu2 }
 0x271   :  { %v2095_v56 = vadd.f32 %v3416_v4, %v2094_v54  ;;  %2927 = vmatmul.msk.bf16.gmra.mxu1 %vm1238_vm1, %v1168_v7  ;;  %v1804_v5 = vmax.f32 %v1551_v62, 0.0  ;;  %v2364_v7 = vrot.slane %v3536_v3, 4 }
 0x272   :  { %v845_v58 = vpop.f32.mrf.mxu0 }
 0x273   :  { %v2379_v11 = vmax.f32 %v2378_v48, %v2095_v56  ;;  %v846_v6 = vadd.f32 %v3571_v29, %v845_v58  ;;  %v3688_v56 = vpop.f32.mrf.mxu3  ;;  %v938_v58 = vadd.f32 %v3571_v29, %v3575_v35 }
 0x275   :  { %2856 = vmatmul.msk.bf16.gmra.mxu0 %vm488_vm0, %v3032_v57  ;;  %v1072_v19 = vmax.f32 %v846_v6, 0.0  ;;  %v936_v57 = vadd.f32 %v3571_v29, %v3563_v22 }
 0x276   :  { %v1552_v0 = vpop.f32.mrf.mxu1 }
 0x277   :  { %v1553_v14 = vadd.f32 %v3649_v61, %v1552_v0  ;;  %v2365_v0 = vmax.f32 %v3536_v3, %v2364_v7 }
 0x278   :  { %v2096_v1 = vpop.f32.mrf.mxu2  ;;  %2879 = vmatmul.msk.bf16.gmra.mxu3 %vm488_vm0, %v3055_v15 }
 0x279   :  { %v1805_v16 = vmax.f32 %v1553_v14, 0.0  ;;  %v2097_v9 = vadd.f32 %v3416_v4, %v2096_v1  ;;  %v1108_v1 = vmax.f32 %v936_v57, 0.0  ;;  %v2366_v35 = vrot.slane %v2365_v0, 2 }
 0x27a   :  { %v847_v10 = vpop.f32.mrf.mxu0 }
 0x27b   :  { %v2380_v13 = vmax.f32 %v2379_v11, %v2097_v9  ;;  %v848_v17 = vadd.f32 %v3571_v29, %v847_v10  ;;  %v1910_v18 = vpack.c.bf16 %v1805_v16, %v1804_v5  ;;  %v1109_v5 = vmax.f32 %v938_v58, 0.0 }
 0x27d   :  { %v1073_v20 = vmax.f32 %v848_v17, 0.0  ;;  %2138 = vmatmul.bf16.gmra.mxu2 %v1910_v18  ;;  %v3700_v18 = vpop.f32.mrf.mxu3 }
 0x27e   :  { %v1555_v23 = vpop.f32.mrf.mxu1 }
 0x27f   :  { %v1169_v24 = vpack.c.bf16 %v1073_v20, %v1072_v19  ;;  %v1556_v33 = vadd.f32 %v3649_v61, %v1555_v23  ;;  %v1187_v19 = vpack.c.bf16 %v1109_v5, %v1108_v1 }
 0x280   :  { %v2099_v25 = vpop.f32.mrf.mxu2 }
 0x281   :  { %v2100_v26 = vadd.f32 %v3416_v4, %v2099_v25  ;;  %2928 = vmatmul.msk.bf16.gmra.mxu1 %vm1238_vm1, %v1169_v24  ;;  %v1806_v38 = vmax.f32 %v1556_v33, 0.0 }
 0x282   :  { %v850_v28 = vpop.f32.mrf.mxu0 }
 0x283   :  { %v2381_v31 = vmax.f32 %v2380_v13, %v2100_v26  ;;  %v851_v39 = vadd.f32 %v3571_v29, %v850_v28  ;;  %v2367_v26 = vmax.f32 %v2365_v0, %v2366_v35 }
 0x285   :  { %2857 = vmatmul.msk.bf16.gmra.mxu0 %vm488_vm0, %v3033_v27  ;;  %v1074_v46 = vmax.f32 %v851_v39, 0.0  ;;  %v3708_v39 = vpop.f32.mrf.mxu3 }
 0x286   :  { %v1557_v34 = vpop.f32.mrf.mxu1 }
 0x287   :  { %v1558_v59 = vadd.f32 %v3649_v61, %v1557_v34 }
 0x288   :  { %v2101_v36 = vpop.f32.mrf.mxu2  ;;  %2880 = vmatmul.msk.bf16.gmra.mxu3 %vm488_vm0, %v3056_v49 }
 0x289   :  { %v1807_v40 = vmax.f32 %v1558_v59, 0.0  ;;  %v2102_v41 = vadd.f32 %v3416_v4, %v2101_v36  ;;  %v3035_v59 = vld [vmem:[%s4173_s0 + $0x150] sm:$0xff]  ;;  %v2368_v36 = vrot.slane %v2367_v26, 1 }
 0x28a   :  { %v852_v63 = vpop.f32.mrf.mxu0 }
 0x28b   :  { %v2382_v43 = vmax.f32 %v2381_v31, %v2102_v41  ;;  %v853_v44 = vadd.f32 %v3571_v29, %v852_v63  ;;  %v1911_v2 = vpack.c.bf16 %v1807_v40, %v1806_v38  ;;  %v941_v40 = vadd.f32 %v3571_v29, %v3587_v45 }
 0x28c   :  { %v943_v41 = vadd.f32 %v3571_v29, %v3594_v55 }
 0x28d   :  { %v1075_v48 = vmax.f32 %v853_v44, 0.0  ;;  %2143 = vmatmul.bf16.gmra.mxu2 %v1911_v2  ;;  %v2369_v2 = vmax.f32 %v2367_v26, %v2368_v36  ;;  %v3722_v58 = vpop.f32.mrf.mxu3 }
 0x28e   :  { %v1560_v50 = vpop.f32.mrf.mxu1  ;;  %v1111_v49 = vmax.f32 %v943_v41, 0.0 }
 0x28f   :  { %v1170_v51 = vpack.c.bf16 %v1075_v48, %v1074_v46  ;;  %v1561_v62 = vadd.f32 %v3649_v61, %v1560_v50  ;;  %v1110_v48 = vmax.f32 %v941_v40, 0.0 }
 0x290   :  { %v2104_v52 = vpop.f32.mrf.mxu2 }
 0x291   :  { %v2105_v32 = vadd.f32 %v3416_v4, %v2104_v52  ;;  %2929 = vmatmul.msk.bf16.gmra.mxu1 %vm1238_vm1, %v1170_v51  ;;  %v1808_v9 = vmax.f32 %v1561_v62, 0.0 }
 0x292   :  { %v855_v54 = vpop.f32.mrf.mxu0 }
 0x293   :  { %v2383_v11 = vmax.f32 %v2382_v43, %v2105_v32  ;;  %v856_v10 = vadd.f32 %v3571_v29, %v855_v54 }
 0x295   :  { %2858 = vmatmul.msk.bf16.gmra.mxu0 %vm488_vm0, %v3034_v53  ;;  %v1076_v23 = vmax.f32 %v856_v10, 0.0  ;;  %v3731_v35 = vpop.f32.mrf.mxu3 }
 0x296   :  { %v1562_v14 = vpop.f32.mrf.mxu1 }
 0x297   :  { %v1563_v6 = vadd.f32 %v3649_v61, %v1562_v14 }
 0x298   :  { %v2106_v16 = vpop.f32.mrf.mxu2  ;;  %2946 = vmatmul.msk.bf16.vlgmr.msrb.gmra.mxu3 %vm1238_vm1, %v1187_v19  ;;  %v948_v19 = vadd.f32 %v3571_v29, %v3613_v21 }
 0x299   :  { %v1809_v22 = vmax.f32 %v1563_v6, 0.0  ;;  %v2107_v13 = vadd.f32 %v3416_v4, %v2106_v16 }
 0x29a   :  { %v857_v17 = vpop.f32.mrf.mxu0 }
 0x29b   :  { %v2384_v20 = vmax.f32 %v2383_v11, %v2107_v13  ;;  %v858_v3 = vadd.f32 %v3571_v29, %v857_v17  ;;  %v1912_v15 = vpack.c.bf16 %v1809_v22, %v1808_v9  ;;  %v1188_v11 = vpack.c.bf16 %v1111_v49, %v1110_v48  ;;  %v3036_v22 = vld [vmem:[%s4173_s0 + $0x158] sm:$0xff] }
 0x29c   :  { %v946_v17 = vadd.f32 %v3571_v29, %v3606_v8 }
 0x29d   :  { %v2385_v24 = vrot.slane %v2384_v20, 4  ;;  %v1077_v25 = vmax.f32 %v858_v3, 0.0  ;;  %2148 = vmatmul.bf16.gmra.mxu2 %v1912_v15 }
 0x29e   :  { %v1565_v27 = vpop.f32.mrf.mxu1 }
 0x29f   :  { %v2386_v28 = vmax.f32 %v2384_v20, %v2385_v24  ;;  %v1171_v31 = vpack.c.bf16 %v1077_v25, %v1076_v23  ;;  %v1566_v43 = vadd.f32 %v3649_v61, %v1565_v27  ;;  %v1112_v23 = vmax.f32 %v946_v17, 0.0 }
 0x2a0   :  { %v2109_v33 = vpop.f32.mrf.mxu2  ;;  %v1113_v24 = vmax.f32 %v948_v19, 0.0 }
 0x2a1   :  { %v2387_v34 = vrot.slane %v2386_v28, 2  ;;  %2930 = vmatmul.msk.bf16.gmra.mxu1 %vm1238_vm1, %v1171_v31  ;;  %v1810_v52 = vmax.f32 %v1566_v43, 0.0  ;;  %v2110_v45 = vadd.f32 %v3416_v4, %v2109_v33 }
 0x2a2   :  { %v860_v38 = vpop.f32.mrf.mxu0  ;;  %v1189_v21 = vpack.c.bf16 %v1113_v24, %v1112_v23  ;;  %v956_v23 = vadd.f32 %v3571_v29, %v3644_v60  ;;  %v958_v24 = vadd.f32 %v3571_v29, %v3656_v12 }
 0x2a3   :  { %v2388_v63 = vmax.f32 %v2386_v28, %v2387_v34  ;;  %v861_v55 = vadd.f32 %v3571_v29, %v860_v38  ;;  %v3742_v34 = vpop.f32.mrf.mxu3 }
 0x2a5   :  { %v2389_v44 = vrot.slane %v2388_v63, 1  ;;  %2859 = vmatmul.msk.bf16.gmra.mxu0 %vm488_vm0, %v3035_v59  ;;  %v1078_v1 = vmax.f32 %v861_v55, 0.0 }
 0x2a6   :  { %v1567_v46 = vpop.f32.mrf.mxu1 }
 0x2a7   :  { %v2390_v50 = vmax.f32 %v2388_v63, %v2389_v44  ;;  %v1568_v51 = vadd.f32 %v3649_v61, %v1567_v46  ;;  %v3037_v46 = vld [vmem:[%s4173_s0 + $0x160] sm:$0xff] }
 0x2a8   :  { %v2111_v32 = vpop.f32.mrf.mxu2  ;;  %2947 = vmatmul.msk.bf16.gmra.mxu3 %vm1238_vm1, %v1188_v11 }
 0x2a9   :  { %v3718_v53 = vsel %vm2525_vm2, %v2390_v50, %v2369_v2  ;;  %v1811_v7 = vmax.f32 %v1568_v51, 0.0  ;;  %v2112_v54 = vadd.f32 %v3416_v4, %v2111_v32  ;;  %v951_v50 = vadd.f32 %v3571_v29, %v3625_v37 }
 0x2aa   :  { %v862_v57 = vpop.f32.mrf.mxu0  ;;  %v953_v51 = vadd.f32 %v3571_v29, %v3632_v47 }
 0x2ab   :  { %v2391_v62 = vmax.f32 %v2110_v45, %v2112_v54  ;;  %v863_v0 = vadd.f32 %v3571_v29, %v862_v57  ;;  %v1913_v14 = vpack.c.bf16 %v1811_v7, %v1810_v52  ;;  %v3756_v49 = vpop.f32.mrf.mxu3  ;;  %v1114_v55 = vmax.f32 %v951_v50, 0.0 }
 0x2ac   :  { %v1115_v7 = vmax.f32 %v953_v51, 0.0 }
 0x2ad   :  { %v1079_v5 = vmax.f32 %v863_v0, 0.0  ;;  %2153 = vmatmul.bf16.gmra.mxu2 %v1913_v14 }
 0x2ae   :  { %v1570_v6 = vpop.f32.mrf.mxu1  ;;  %v1190_v47 = vpack.c.bf16 %v1115_v7, %v1114_v55  ;;  %v961_v55 = vadd.f32 %v3571_v29, %v3668_v30  ;;  %v963_v7 = vadd.f32 %v3571_v29, %v3675_v42 }
 0x2af   :  { %v1172_v16 = vpack.c.bf16 %v1079_v5, %v1078_v1  ;;  %v1571_v3 = vadd.f32 %v3649_v61, %v1570_v6 }
 0x2b0   :  { %v2114_v9 = vpop.f32.mrf.mxu2 }
 0x2b1   :  { %v2115_v10 = vadd.f32 %v3416_v4, %v2114_v9  ;;  %2931 = vmatmul.msk.bf16.gmra.mxu1 %vm1238_vm1, %v1172_v16  ;;  %v1812_v27 = vmax.f32 %v1571_v3, 0.0 }
 0x2b2   :  { %v865_v13 = vpop.f32.mrf.mxu0 }
 0x2b3   :  { %v2392_v20 = vmax.f32 %v2391_v62, %v2115_v10  ;;  %v866_v28 = vadd.f32 %v3571_v29, %v865_v13  ;;  %v3767_v1 = vpop.f32.mrf.mxu3 }
 0x2b5   :  { %2860 = vmatmul.msk.bf16.gmra.mxu0 %vm488_vm0, %v3036_v22  ;;  %v1080_v40 = vmax.f32 %v866_v28, 0.0  ;;  %v1116_v28 = vmax.f32 %v956_v23, 0.0 }
 0x2b6   :  { %v1572_v15 = vpop.f32.mrf.mxu1 }
 0x2b7   :  { %v1573_v25 = vadd.f32 %v3649_v61, %v1572_v15 }
 0x2b8   :  { %v2116_v26 = vpop.f32.mrf.mxu2  ;;  %2948 = vmatmul.msk.bf16.gmra.mxu3 %vm1238_vm1, %v1189_v21 }
 0x2b9   :  { %v1813_v31 = vmax.f32 %v1573_v25, 0.0  ;;  %v2117_v8 = vadd.f32 %v3416_v4, %v2116_v26  ;;  %v3749_v4 = vld [vmem:[%s4179_s6] ss:$0 sm:$0xff] }
 0x2ba   :  { %v867_v33 = vpop.f32.mrf.mxu0 }
 0x2bb   :  { %v2393_v59 = vmax.f32 %v2392_v20, %v2117_v8  ;;  %v868_v36 = vadd.f32 %v3571_v29, %v867_v33  ;;  %v1914_v38 = vpack.c.bf16 %v1813_v31, %v1812_v27  ;;  %v3038_v20 = vld [vmem:[%s4173_s0 + $0x168] sm:$0xff]  ;;  %v3776_v15 = vpop.f32.mrf.mxu3  ;;  %v1117_v31 = vmax.f32 %v958_v24, 0.0 }
 0x2bd   :  { %v1081_v41 = vmax.f32 %v868_v36, 0.0  ;;  %2158 = vmatmul.bf16.gmra.mxu2 %v1914_v38  ;;  %v1191_v12 = vpack.c.bf16 %v1117_v31, %v1116_v28  ;;  %v966_v28 = vadd.f32 %v3571_v29, %v3688_v56  ;;  %v968_v31 = vadd.f32 %v3571_v29, %v3700_v18 }
 0x2be   :  { %v1575_v63 = vpop.f32.mrf.mxu1 }
 0x2bf   :  { %v1173_v43 = vpack.c.bf16 %v1081_v41, %v1080_v40  ;;  %v1576_v45 = vadd.f32 %v3649_v61, %v1575_v63 }
 0x2c0   :  { %v2119_v44 = vpop.f32.mrf.mxu2 }
 0x2c1   :  { %v2120_v2 = vadd.f32 %v3749_v4, %v2119_v44  ;;  %2932 = vmatmul.msk.bf16.gmra.mxu1 %vm1238_vm1, %v1173_v43  ;;  %v1814_v11 = vmax.f32 %v1576_v45, 0.0 }
 0x2c2   :  { %v870_v48 = vpop.f32.mrf.mxu0 }
 0x2c3   :  { %v2394_v52 = vmax.f32 %v2393_v59, %v2120_v2  ;;  %v871_v62 = vadd.f32 %v3571_v29, %v870_v48  ;;  %v3787_v40 = vpop.f32.mrf.mxu3 }
 0x2c5   :  { %2861 = vmatmul.msk.bf16.gmra.mxu0 %vm488_vm0, %v3037_v46  ;;  %v1082_v9 = vmax.f32 %v871_v62, 0.0  ;;  %v1118_v62 = vmax.f32 %v961_v55, 0.0 }
 0x2c6   :  { %v1577_v32 = vpop.f32.mrf.mxu1 }
 0x2c7   :  { %v1578_v54 = vadd.f32 %v3649_v61, %v1577_v32 }
 0x2c8   :  { %v2121_v57 = vpop.f32.mrf.mxu2  ;;  %2949 = vmatmul.msk.bf16.gmra.mxu3 %vm1238_vm1, %v1190_v47 }
 0x2c9   :  { %v1815_v0 = vmax.f32 %v1578_v54, 0.0  ;;  %v2122_v37 = vadd.f32 %v3749_v4, %v2121_v57 }
 0x2ca   :  { %v872_v14 = vpop.f32.mrf.mxu0 }
 0x2cb   :  { %v2395_v5 = vmax.f32 %v2394_v52, %v2122_v37  ;;  %v873_v6 = vadd.f32 %v3571_v29, %v872_v14  ;;  %v1915_v16 = vpack.c.bf16 %v1815_v0, %v1814_v11  ;;  %v3039_v52 = vld [vmem:[%s4173_s0 + $0x170] sm:$0xff]  ;;  %v3796_v32 = vpop.f32.mrf.mxu3  ;;  %v1119_v0 = vmax.f32 %v963_v7, 0.0 }
 0x2cd   :  { %v1083_v10 = vmax.f32 %v873_v6, 0.0  ;;  %2163 = vmatmul.bf16.gmra.mxu2 %v1915_v16  ;;  %v1192_v42 = vpack.c.bf16 %v1119_v0, %v1118_v62  ;;  %v971_v62 = vadd.f32 %v3571_v29, %v3708_v39  ;;  %v973_v0 = vadd.f32 %v3571_v29, %v3722_v58 }
 0x2ce   :  { %v1580_v22 = vpop.f32.mrf.mxu1 }
 0x2cf   :  { %v1174_v13 = vpack.c.bf16 %v1083_v10, %v1082_v9  ;;  %v1581_v26 = vadd.f32 %v3649_v61, %v1580_v22 }
 0x2d0   :  { %v2124_v17 = vpop.f32.mrf.mxu2 }
 0x2d1   :  { %v2125_v19 = vadd.f32 %v3749_v4, %v2124_v17  ;;  %2933 = vmatmul.msk.bf16.gmra.mxu1 %vm1238_vm1, %v1174_v13  ;;  %v1816_v21 = vmax.f32 %v1581_v26, 0.0 }
 0x2d2   :  { %v875_v3 = vpop.f32.mrf.mxu0 }
 0x2d3   :  { %v2396_v25 = vmax.f32 %v2395_v5, %v2125_v19  ;;  %v876_v59 = vadd.f32 %v3571_v29, %v875_v3  ;;  %v3807_v9 = vpop.f32.mrf.mxu3 }
 0x2d5   :  { %2862 = vmatmul.msk.bf16.gmra.mxu0 %vm488_vm0, %v3038_v20  ;;  %v1084_v44 = vmax.f32 %v876_v59, 0.0  ;;  %v1120_v59 = vmax.f32 %v966_v28, 0.0 }
 0x2d6   :  { %v1582_v27 = vpop.f32.mrf.mxu1 }
 0x2d7   :  { %v1583_v8 = vadd.f32 %v3649_v61, %v1582_v27 }
 0x2d8   :  { %v2126_v33 = vpop.f32.mrf.mxu2  ;;  %2950 = vmatmul.msk.bf16.gmra.mxu3 %vm1238_vm1, %v1191_v12 }
 0x2d9   :  { %v1817_v36 = vmax.f32 %v1583_v8, 0.0  ;;  %v2127_v60 = vadd.f32 %v3749_v4, %v2126_v33 }
 0x2da   :  { %v877_v38 = vpop.f32.mrf.mxu0 }
 0x2db   :  { %v2397_v41 = vmax.f32 %v2396_v25, %v2127_v60  ;;  %v878_v63 = vadd.f32 %v3571_v29, %v877_v38  ;;  %v1916_v43 = vpack.c.bf16 %v1817_v36, %v1816_v21  ;;  %v3040_v25 = vld [vmem:[%s4173_s0 + $0x178] sm:$0xff]  ;;  %v1121_v36 = vmax.f32 %v968_v31, 0.0 }
 0x2dd   :  { %v1085_v2 = vmax.f32 %v878_v63, 0.0  ;;  %2168 = vmatmul.bf16.gmra.mxu2 %v1916_v43  ;;  %v1193_v18 = vpack.c.bf16 %v1121_v36, %v1120_v59  ;;  %v978_v59 = vadd.f32 %v3571_v29, %v3742_v34 }
 0x2de   :  { %v1585_v46 = vpop.f32.mrf.mxu1 }
 0x2df   :  { %v1175_v48 = vpack.c.bf16 %v1085_v2, %v1084_v44  ;;  %v1586_v57 = vadd.f32 %v3649_v61, %v1585_v46 }
 0x2e0   :  { %v2129_v50 = vpop.f32.mrf.mxu2 }
 0x2e1   :  { %v2130_v51 = vadd.f32 %v3749_v4, %v2129_v50  ;;  %2934 = vmatmul.msk.bf16.gmra.mxu1 %vm1238_vm1, %v1175_v48  ;;  %v1818_v47 = vmax.f32 %v1586_v57, 0.0 }
 0x2e2   :  { %v880_v45 = vpop.f32.mrf.mxu0 }
 0x2e3   :  { %v2398_v54 = vmax.f32 %v2397_v41, %v2130_v51  ;;  %v881_v5 = vadd.f32 %v3571_v29, %v880_v45 }
 0x2e5   :  { %2863 = vmatmul.msk.bf16.gmra.mxu0 %vm488_vm0, %v3039_v52  ;;  %v1086_v17 = vmax.f32 %v881_v5, 0.0  ;;  %v1122_v5 = vmax.f32 %v971_v62, 0.0 }
 0x2e6   :  { %v1587_v11 = vpop.f32.mrf.mxu1 }
 0x2e7   :  { %v1588_v37 = vadd.f32 %v3649_v61, %v1587_v11 }
 0x2e8   :  { %v2131_v14 = vpop.f32.mrf.mxu2  ;;  %2951 = vmatmul.msk.bf16.gmra.mxu3 %vm1238_vm1, %v1192_v42 }
 0x2e9   :  { %v1819_v6 = vmax.f32 %v1588_v37, 0.0  ;;  %v2132_v30 = vadd.f32 %v3749_v4, %v2131_v14 }
 0x2ea   :  { %v882_v16 = vpop.f32.mrf.mxu0 }
 0x2eb   :  { %v2399_v10 = vmax.f32 %v2398_v54, %v2132_v30  ;;  %v883_v22 = vadd.f32 %v3571_v29, %v882_v16  ;;  %v1917_v13 = vpack.c.bf16 %v1819_v6, %v1818_v47  ;;  %v3816_v27 = vpop.f32.mrf.mxu3  ;;  %v3041_v54 = vld [vmem:[%s4173_s0 + $0x180] sm:$0xff]  ;;  %v1123_v6 = vmax.f32 %v973_v0, 0.0 }
 0x2ed   :  { %v1087_v19 = vmax.f32 %v883_v22, 0.0  ;;  %2173 = vmatmul.bf16.gmra.mxu2 %v1917_v13  ;;  %v1194_v58 = vpack.c.bf16 %v1123_v6, %v1122_v5 }
 0x2ee   :  { %v1590_v20 = vpop.f32.mrf.mxu1 }
 0x2ef   :  { %v1176_v3 = vpack.c.bf16 %v1087_v19, %v1086_v17  ;;  %v1591_v33 = vadd.f32 %v3649_v61, %v1590_v20 }
 0x2f0   :  { %v2134_v23 = vpop.f32.mrf.mxu2 }
 0x2f1   :  { %v2135_v24 = vadd.f32 %v3749_v4, %v2134_v23  ;;  %2935 = vmatmul.msk.bf16.gmra.mxu1 %vm1238_vm1, %v1176_v3  ;;  %v1820_v12 = vmax.f32 %v1591_v33, 0.0 }
 0x2f2   :  { %v885_v26 = vpop.f32.mrf.mxu0 }
 0x2f3   :  { %v2400_v8 = vmax.f32 %v2399_v10, %v2135_v24  ;;  %v886_v41 = vadd.f32 %v3571_v29, %v885_v26  ;;  %v3827_v44 = vpop.f32.mrf.mxu3 }
 0x2f5   :  { %2864 = vmatmul.msk.bf16.gmra.mxu0 %vm488_vm0, %v3040_v25  ;;  %v1088_v50 = vmax.f32 %v886_v41, 0.0  ;;  %v1125_v41 = vmax.f32 %v978_v59, 0.0 }
 0x2f6   :  { %v1592_v21 = vpop.f32.mrf.mxu1 }
 0x2f7   :  { %v1593_v60 = vadd.f32 %v3649_v61, %v1592_v21  ;;  %v976_v21 = vadd.f32 %v3571_v29, %v3731_v35 }
 0x2f8   :  { %v2136_v38 = vpop.f32.mrf.mxu2  ;;  %2952 = vmatmul.msk.bf16.gmra.mxu3 %vm1238_vm1, %v1193_v18 }
 0x2f9   :  { %v1821_v63 = vmax.f32 %v1593_v60, 0.0  ;;  %v2137_v56 = vadd.f32 %v3749_v4, %v2136_v38 }
 0x2fa   :  { %v887_v43 = vpop.f32.mrf.mxu0 }
 0x2fb   :  { %v2401_v2 = vmax.f32 %v2400_v8, %v2137_v56  ;;  %v888_v46 = vadd.f32 %v3571_v29, %v887_v43  ;;  %v1918_v48 = vpack.c.bf16 %v1821_v63, %v1820_v12  ;;  %v3836_v11 = vpop.f32.mrf.mxu3  ;;  %v1124_v12 = vmax.f32 %v976_v21, 0.0 }
 0x2fd   :  { %v1089_v51 = vmax.f32 %v888_v46, 0.0  ;;  %2178 = vmatmul.bf16.gmra.mxu2 %v1918_v48 }
 0x2fe   :  { %v1595_v52 = vpop.f32.mrf.mxu1 }
 0x2ff   :  { %v1177_v45 = vpack.c.bf16 %v1089_v51, %v1088_v50  ;;  %v1596_v14 = vadd.f32 %v3649_v61, %v1595_v52  ;;  %v1195_v50 = vpack.c.bf16 %v1125_v41, %v1124_v12 }
 0x300   :  { %v2139_v55 = vpop.f32.mrf.mxu2 }
 0x301   :  { %v2140_v7 = vadd.f32 %v3749_v4, %v2139_v55  ;;  %2936 = vmatmul.msk.bf16.gmra.mxu1 %vm1238_vm1, %v1177_v45  ;;  %v1822_v42 = vmax.f32 %v1596_v14, 0.0  ;;  %v981_v14 = vadd.f32 %v3571_v29, %v3756_v49 }
 0x302   :  { %v890_v57 = vpop.f32.mrf.mxu0 }
 0x303   :  { %v2402_v37 = vmax.f32 %v2401_v2, %v2140_v7  ;;  %v891_v10 = vadd.f32 %v3571_v29, %v890_v57  ;;  %v3847_v17 = vpop.f32.mrf.mxu3 }
 0x305   :  { %2865 = vmatmul.msk.bf16.gmra.mxu0 %vm488_vm0, %v3041_v54  ;;  %v1090_v23 = vmax.f32 %v891_v10, 0.0  ;;  %v1126_v10 = vmax.f32 %v981_v14, 0.0 }
 0x306   :  { %v1597_v47 = vpop.f32.mrf.mxu1 }
 0x307   :  { %v1598_v30 = vadd.f32 %v3649_v61, %v1597_v47  ;;  %v983_v47 = vadd.f32 %v3571_v29, %v3767_v1 }
 0x308   :  { %v2141_v16 = vpop.f32.mrf.mxu2  ;;  %2953 = vmatmul.msk.bf16.gmra.mxu3 %vm1238_vm1, %v1194_v58 }
 0x309   :  { %v1823_v22 = vmax.f32 %v1598_v30, 0.0  ;;  %v2142_v39 = vadd.f32 %v3749_v4, %v2141_v16 }
 0x30a   :  { %v892_v13 = vpop.f32.mrf.mxu0 }
 0x30b   :  { %v2403_v19 = vmax.f32 %v2402_v37, %v2142_v39  ;;  %v893_v20 = vadd.f32 %v3571_v29, %v892_v13  ;;  %v1919_v3 = vpack.c.bf16 %v1823_v22, %v1822_v42  ;;  %v3853_v33 = vpop.f32.mrf.mxu3  ;;  %v1127_v22 = vmax.f32 %v983_v47, 0.0 }
 0x30d   :  { %v1091_v24 = vmax.f32 %v893_v20, 0.0  ;;  %2183 = vmatmul.bf16.gmra.mxu2 %v1919_v3 }
 0x30e   :  { %v1600_v25 = vpop.f32.mrf.mxu1 }
 0x30f   :  { %v1178_v26 = vpack.c.bf16 %v1091_v24, %v1090_v23  ;;  %v1601_v60 = vadd.f32 %v3649_v61, %v1600_v25 }
 0x310   :  { %v2144_v28 = vpop.f32.mrf.mxu2 }
 0x311   :  { %v2145_v31 = vadd.f32 %v3749_v4, %v2144_v28  ;;  %2937 = vmatmul.msk.bf16.gmra.mxu1 %vm1238_vm1, %v1178_v26  ;;  %v1824_v43 = vmax.f32 %v1601_v60, 0.0  ;;  %v1196_v26 = vpack.c.bf16 %v1127_v22, %v1126_v10 }
 0x312   :  { %v895_v8 = vpop.f32.mrf.mxu0 }
 0x313   :  { %v2404_v36 = vmax.f32 %v2403_v19, %v2145_v31  ;;  %v896_v18 = vadd.f32 %v3571_v29, %v895_v8  ;;  %v3863_v35 = vpop.f32.mrf.mxu3 }
 0x315   :  { %v1092_v45 = vmax.f32 %v896_v18, 0.0 }
 0x316   :  { %v1602_v38 = vpop.f32.mrf.mxu1 }
 0x317   :  { %v1603_v63 = vadd.f32 %v3649_v61, %v1602_v38 }
 0x318   :  { %v2146_v56 = vpop.f32.mrf.mxu2  ;;  %2954 = vmatmul.msk.bf16.gmra.mxu3 %vm1238_vm1, %v1195_v50 }
 0x319   :  { %v1825_v2 = vmax.f32 %v1603_v63, 0.0  ;;  %v2147_v46 = vadd.f32 %v3749_v4, %v2146_v56 }
 0x31a   :  { %v897_v48 = vpop.f32.mrf.mxu0 }
 0x31b   :  { %v2405_v34 = vmax.f32 %v2404_v36, %v2147_v46  ;;  %v898_v51 = vadd.f32 %v3571_v29, %v897_v48  ;;  %v1920_v52 = vpack.c.bf16 %v1825_v2, %v1824_v43  ;;  %v1685_v6 = vpop.f32.mrf.mxu3  ;;  %v986_v2 = vadd.f32 %v3571_v29, %v3776_v15  ;;  %v3898_v15 = vld [vmem:[%s4175_s2] ss:$0 sm:$0xff] }
 0x31c   :  { %v1686_v13 = vadd.f32 %v3649_v61, %v1685_v6  ;;  %v988_v46 = vadd.f32 %v3571_v29, %v3787_v40 }
 0x31d   :  { %v2406_v55 = vrot.slane %v2405_v34, 4  ;;  %v1093_v7 = vmax.f32 %v898_v51, 0.0  ;;  %2188 = vmatmul.bf16.gmra.mxu2 %v1920_v52  ;;  %v1128_v52 = vmax.f32 %v986_v2, 0.0 }
 0x31e   :  { %v1605_v54 = vpop.f32.mrf.mxu1  ;;  %v1858_v31 = vmax.f32 %v1686_v13, 0.0 }
 0x31f   :  { %v2407_v57 = vmax.f32 %v2405_v34, %v2406_v55  ;;  %v1179_v62 = vpack.c.bf16 %v1093_v7, %v1092_v45  ;;  %v1606_v16 = vadd.f32 %v3649_v61, %v1605_v54  ;;  %v1129_v45 = vmax.f32 %v988_v46, 0.0 }
 0x320   :  { %v2149_v0 = vpop.f32.mrf.mxu2 }
 0x321   :  { %v2408_v37 = vrot.slane %v2407_v57, 2  ;;  %2938 = vmatmul.msk.bf16.gmra.mxu1 %vm1238_vm1, %v1179_v62  ;;  %v1826_v20 = vmax.f32 %v1606_v16, 0.0  ;;  %v2150_v49 = vadd.f32 %v3749_v4, %v2149_v0 }
 0x322   :  { %v900_v5 = vpop.f32.mrf.mxu0 }
 0x323   :  { %v2409_v30 = vmax.f32 %v2407_v57, %v2408_v37  ;;  %v901_v23 = vadd.f32 %v3571_v29, %v900_v5  ;;  %v1687_v8 = vpop.f32.mrf.mxu3  ;;  %v1197_v37 = vpack.c.bf16 %v1129_v45, %v1128_v52 }
 0x324   :  { %v1688_v60 = vadd.f32 %v3649_v61, %v1687_v8 }
 0x325   :  { %v2410_v42 = vrot.slane %v2409_v30, 1  ;;  %v1094_v38 = vmax.f32 %v901_v23, 0.0  ;;  %v993_v23 = vadd.f32 %v3898_v15, %v3807_v9 }
 0x326   :  { %v1607_v39 = vpop.f32.mrf.mxu1 }
 0x327   :  { %v2411_v58 = vmax.f32 %v2409_v30, %v2410_v42  ;;  %v1608_v19 = vadd.f32 %v3649_v61, %v1607_v39  ;;  %v1131_v8 = vmax.f32 %v993_v23, 0.0 }
 0x328   :  { %v2151_v3 = vpop.f32.mrf.mxu2  ;;  %2955 = vmatmul.msk.bf16.gmra.mxu3 %vm1238_vm1, %v1196_v26 }
 0x329   :  { %v3877_v1 = vsel %vm2527_vm3, %v2411_v58, %v3718_v53  ;;  %v1827_v24 = vmax.f32 %v1608_v19, 0.0  ;;  %v2152_v25 = vadd.f32 %v3749_v4, %v2151_v3  ;;  %v1859_v53 = vmax.f32 %v1688_v60, 0.0 }
 0x32a   :  { %v902_v28 = vpop.f32.mrf.mxu0  ;;  %v991_v3 = vadd.f32 %v3898_v15, %v3796_v32 }
 0x32b   :  { %v2412_v21 = vmax.f32 %v2150_v49, %v2152_v25  ;;  %v903_v59 = vadd.f32 %v3571_v29, %v902_v28  ;;  %v1921_v36 = vpack.c.bf16 %v1827_v24, %v1826_v20  ;;  %v3884_v56 = vpack.c.bf16 %v1859_v53, %v1858_v31  ;;  %v1690_v50 = vpop.f32.mrf.mxu3 }
 0x32c   :  { %v1691_v7 = vadd.f32 %v3649_v61, %v1690_v50  ;;  %v1130_v31 = vmax.f32 %v991_v3, 0.0 }
 0x32d   :  { %v1095_v12 = vmax.f32 %v903_v59, 0.0  ;;  %2193 = vmatmul.bf16.gmra.mxu2 %v1921_v36 }
 0x32e   :  { %v1610_v41 = vpop.f32.mrf.mxu1  ;;  %v1860_v47 = vmax.f32 %v1691_v7, 0.0  ;;  %v1198_v9 = vpack.c.bf16 %v1131_v8, %v1130_v31 }
 0x32f   :  { %v1180_v63 = vpack.c.bf16 %v1095_v12, %v1094_v38  ;;  %v1611_v51 = vadd.f32 %v3649_v61, %v1610_v41 }
 0x330   :  { %v2154_v43 = vpop.f32.mrf.mxu2 }
 0x331   :  { %v2155_v18 = vadd.f32 %v3749_v4, %v2154_v43  ;;  %2939 = vmatmul.msk.bf16.gmra.mxu1 %vm1238_vm1, %v1180_v63  ;;  %v1828_v62 = vmax.f32 %v1611_v51, 0.0 }
 0x332   :  { %v905_v48 = vpop.f32.mrf.mxu0 }
 0x333   :  { %v2413_v34 = vmax.f32 %v2412_v21, %v2155_v18  ;;  %v906_v29 = vadd.f32 %v3898_v15, %v905_v48  ;;  %v1692_v5 = vpop.f32.mrf.mxu3 }
 0x334   :  { %v1693_v42 = vadd.f32 %v3649_v61, %v1692_v5 }
 0x335   :  { %v1096_v10 = vmax.f32 %v906_v29, 0.0  ;;  %v998_v29 = vadd.f32 %v3898_v15, %v3827_v44 }
 0x336   :  { %v1612_v55 = vpop.f32.mrf.mxu1  ;;  %v1861_v39 = vmax.f32 %v1693_v42, 0.0 }
 0x337   :  { %v1613_v54 = vadd.f32 %v3649_v61, %v1612_v55 }
 0x338   :  { %v2156_v57 = vpop.f32.mrf.mxu2  ;;  %2956 = vmatmul.msk.bf16.gmra.mxu3 %vm1238_vm1, %v1197_v37  ;;  %v3905_v19 = vpack.c.bf16 %v1861_v39, %v1860_v47  ;;  %v1133_v47 = vmax.f32 %v998_v29, 0.0 }
 0x339   :  { %v1829_v40 = vmax.f32 %v1613_v54, 0.0  ;;  %v2157_v0 = vadd.f32 %v3749_v4, %v2156_v57 }
 0x33a   :  { %v907_v14 = vpop.f32.mrf.mxu0 }
 0x33b   :  { %v2414_v6 = vmax.f32 %v2413_v34, %v2157_v0  ;;  %v908_v30 = vadd.f32 %v3898_v15, %v907_v14  ;;  %v1922_v16 = vpack.c.bf16 %v1829_v40, %v1828_v62  ;;  %v1695_v25 = vpop.f32.mrf.mxu3  ;;  %v996_v62 = vadd.f32 %v3898_v15, %v3816_v27 }
 0x33c   :  { %v1696_v59 = vadd.f32 %v3649_v61, %v1695_v25 }
 0x33d   :  { %v1097_v22 = vmax.f32 %v908_v30, 0.0  ;;  %2198 = vmatmul.bf16.gmra.mxu2 %v1922_v16  ;;  %v1132_v14 = vmax.f32 %v996_v62, 0.0 }
 0x33e   :  { %v1615_v13 = vpop.f32.mrf.mxu1  ;;  %v1862_v63 = vmax.f32 %v1696_v59, 0.0 }
 0x33f   :  { %v1181_v58 = vpack.c.bf16 %v1097_v22, %v1096_v10  ;;  %v1616_v28 = vadd.f32 %v3649_v61, %v1615_v13  ;;  %v1199_v27 = vpack.c.bf16 %v1133_v47, %v1132_v14 }
 0x340   :  { %v2159_v20 = vpop.f32.mrf.mxu2 }
 0x341   :  { %v2160_v49 = vadd.f32 %v3749_v4, %v2159_v20  ;;  %2940 = vmatmul.msk.bf16.gmra.mxu1 %vm1238_vm1, %v1181_v58  ;;  %v1830_v38 = vmax.f32 %v1616_v28, 0.0  ;;  %v1003_v28 = vadd.f32 %v3898_v15, %v3847_v17 }
 0x342   :  { %v910_v24 = vpop.f32.mrf.mxu0 }
 0x343   :  { %v2415_v26 = vmax.f32 %v2414_v6, %v2160_v49  ;;  %v911_v12 = vadd.f32 %v3898_v15, %v910_v24  ;;  %v1697_v43 = vpop.f32.mrf.mxu3 }
 0x344   :  { %v1698_v48 = vadd.f32 %v3649_v61, %v1697_v43 }
 0x345   :  { %v1098_v50 = vmax.f32 %v911_v12, 0.0 }
 0x346   :  { %v1617_v21 = vpop.f32.mrf.mxu1  ;;  %v1863_v51 = vmax.f32 %v1698_v48, 0.0 }
 0x347   :  { %v1618_v36 = vadd.f32 %v3649_v61, %v1617_v21 }
 0x348   :  { %v2161_v60 = vpop.f32.mrf.mxu2  ;;  %2957 = vmatmul.msk.bf16.gmra.mxu3 %vm1238_vm1, %v1198_v9  ;;  %v3921_v55 = vpack.c.bf16 %v1863_v51, %v1862_v63  ;;  %v1006_v51 = vadd.f32 %v3898_v15, %v3853_v33 }
 0x349   :  { %v1831_v32 = vmax.f32 %v1618_v36, 0.0  ;;  %v2162_v53 = vadd.f32 %v3749_v4, %v2161_v60  ;;  %v1135_v36 = vmax.f32 %v1003_v28, 0.0 }
 0x34a   :  { %v912_v41 = vpop.f32.mrf.mxu0  ;;  %v1136_v62 = vmax.f32 %v1006_v51, 0.0 }
 0x34b   :  { %v2416_v18 = vmax.f32 %v2415_v26, %v2162_v53  ;;  %v913_v2 = vadd.f32 %v3898_v15, %v912_v41  ;;  %v1923_v46 = vpack.c.bf16 %v1831_v32, %v1830_v38  ;;  %v1001_v26 = vadd.f32 %v3898_v15, %v3836_v11 }
 0x34d   :  { %v1099_v34 = vmax.f32 %v913_v2, 0.0  ;;  %2203 = vmatmul.bf16.gmra.mxu2 %v1923_v46  ;;  %v1134_v59 = vmax.f32 %v1001_v26, 0.0 }
 0x34e   :  { %v1620_v52 = vpop.f32.mrf.mxu1 }
 0x34f   :  { %v1182_v45 = vpack.c.bf16 %v1099_v34, %v1098_v50  ;;  %v1621_v0 = vadd.f32 %v3649_v61, %v1620_v52  ;;  %v1200_v11 = vpack.c.bf16 %v1135_v36, %v1134_v59  ;;  %v1008_v52 = vadd.f32 %v3898_v15, %v3863_v35 }
 0x350   :  { %v2164_v7 = vpop.f32.mrf.mxu2 }
 0x351   :  { %v2165_v54 = vadd.f32 %v3749_v4, %v2164_v7  ;;  %2941 = vmatmul.msk.bf16.gmra.mxu1 %vm1238_vm1, %v1182_v45  ;;  %v1832_v30 = vmax.f32 %v1621_v0, 0.0  ;;  %v3956_v7 = vld [vmem:[%s4177_s4] ss:$0 sm:$0xff]  ;;  %v1137_v29 = vmax.f32 %v1008_v52, 0.0 }
 0x352   :  { %v915_v57 = vpop.f32.mrf.mxu0 }
 0x353   :  { %v2417_v40 = vmax.f32 %v2416_v18, %v2165_v54  ;;  %v916_v16 = vadd.f32 %v3898_v15, %v915_v57 }
 0x355   :  { %v1100_v58 = vmax.f32 %v916_v16, 0.0 }
 0x356   :  { %v1622_v37 = vpop.f32.mrf.mxu1 }
 0x357   :  { %v1623_v5 = vadd.f32 %v3649_v61, %v1622_v37 }
 0x358   :  { %v2166_v6 = vpop.f32.mrf.mxu2  ;;  %2958 = vmatmul.msk.bf16.gmra.mxu3 %vm1238_vm1, %v1199_v27 }
 0x359   :  { %v1833_v42 = vmax.f32 %v1623_v5, 0.0  ;;  %v2167_v10 = vadd.f32 %v3749_v4, %v2166_v6  ;;  %v1201_v5 = vpack.c.bf16 %v1137_v29, %v1136_v62 }
 0x35a   :  { %v917_v22 = vpop.f32.mrf.mxu0 }
 0x35b   :  { %v2418_v39 = vmax.f32 %v2417_v40, %v2167_v10  ;;  %v918_v44 = vadd.f32 %v3898_v15, %v917_v22  ;;  %v1924_v13 = vpack.c.bf16 %v1833_v42, %v1832_v30 }
 0x35d   :  { %v1101_v20 = vmax.f32 %v918_v44, 0.0  ;;  %2208 = vmatmul.bf16.gmra.mxu2 %v1924_v13 }
 0x35e   :  { %v1625_v49 = vpop.f32.mrf.mxu1 }
 0x35f   :  { %v1183_v3 = vpack.c.bf16 %v1101_v20, %v1100_v58  ;;  %v1626_v8 = vadd.f32 %v3649_v61, %v1625_v49 }
 0x360   :  { %v2169_v23 = vpop.f32.mrf.mxu2 }
 0x361   :  { %v2170_v24 = vadd.f32 %v3749_v4, %v2169_v23  ;;  %2942 = vmatmul.msk.bf16.gmra.mxu1 %vm1238_vm1, %v1183_v3  ;;  %v1834_v12 = vmax.f32 %v1626_v8, 0.0 }
 0x362   :  { %v920_v25 = vpop.f32.mrf.mxu0 }
 0x363   :  { %v2419_v31 = vmax.f32 %v2418_v39, %v2170_v24  ;;  %v921_v32 = vadd.f32 %v3898_v15, %v920_v25 }
 0x365   :  { %v1102_v18 = vmax.f32 %v921_v32, 0.0 }
 0x366   :  { %v1627_v21 = vpop.f32.mrf.mxu1 }
 0x367   :  { %v1628_v60 = vadd.f32 %v3649_v61, %v1627_v21 }
 0x368   :  { %v2171_v38 = vpop.f32.mrf.mxu2  ;;  %2959 = vmatmul.msk.bf16.gmra.mxu3 %vm1238_vm1, %v1200_v11 }
 0x369   :  { %v1835_v53 = vmax.f32 %v1628_v60, 0.0  ;;  %v2172_v9 = vadd.f32 %v3749_v4, %v2171_v38 }
 0x36a   :  { %v922_v41 = vpop.f32.mrf.mxu0 }
 0x36b   :  { %v1925_v63 = vpack.c.bf16 %v1835_v53, %v1834_v12  ;;  %v2420_v43 = vmax.f32 %v2419_v31, %v2172_v9  ;;  %v923_v17 = vadd.f32 %v3898_v15, %v922_v41 }
 0x36d   :  { %v1103_v2 = vmax.f32 %v923_v17, 0.0  ;;  %2213 = vmatmul.bf16.gmra.mxu2 %v1925_v63 }
 0x36e   :  { %v1630_v46 = vpop.f32.mrf.mxu1 }
 0x36f   :  { %v1184_v48 = vpack.c.bf16 %v1103_v2, %v1102_v18  ;;  %v1631_v54 = vadd.f32 %v3956_v7, %v1630_v46 }
 0x370   :  { %v2174_v61 = vpop.f32.mrf.mxu2 }
 0x371   :  { %v2175_v50 = vadd.f32 %v3749_v4, %v2174_v61  ;;  %2943 = vmatmul.msk.bf16.gmra.mxu1 %vm1238_vm1, %v1184_v48  ;;  %v1836_v37 = vmax.f32 %v1631_v54, 0.0 }
 0x372   :  { %v925_v34 = vpop.f32.mrf.mxu0 }
 0x373   :  { %v2421_v45 = vmax.f32 %v2420_v43, %v2175_v50  ;;  %v926_v33 = vadd.f32 %v3898_v15, %v925_v34 }
 0x375   :  { %v1104_v42 = vmax.f32 %v926_v33, 0.0 }
 0x376   :  { %v1632_v57 = vpop.f32.mrf.mxu1 }
 0x377   :  { %v1633_v40 = vadd.f32 %v3956_v7, %v1632_v57 }
 0x378   :  { %v2176_v0 = vpop.f32.mrf.mxu2  ;;  %2960 = vmatmul.msk.bf16.gmra.mxu3 %vm1238_vm1, %v1201_v5 }
 0x379   :  { %v1837_v14 = vmax.f32 %v1633_v40, 0.0  ;;  %v2177_v35 = vadd.f32 %v3749_v4, %v2176_v0 }
 0x37a   :  { %v927_v47 = vpop.f32.mrf.mxu0 }
 0x37b   :  { %v1926_v6 = vpack.c.bf16 %v1837_v14, %v1836_v37  ;;  %v2422_v30 = vmax.f32 %v2421_v45, %v2177_v35  ;;  %v928_v16 = vadd.f32 %v3898_v15, %v927_v47 }
 0x37d   :  { %v1105_v10 = vmax.f32 %v928_v16, 0.0  ;;  %2218 = vmatmul.bf16.gmra.mxu2 %v1926_v6 }
 0x37e   :  { %v1635_v22 = vpop.f32.mrf.mxu1 }
 0x37f   :  { %v1185_v27 = vpack.c.bf16 %v1105_v10, %v1104_v42  ;;  %v1636_v20 = vadd.f32 %v3956_v7, %v1635_v22  ;;  %v3984_v42 = vpop.f32.mrf.mxu3 }
 0x380   :  { %v2179_v39 = vpop.f32.mrf.mxu2 }
 0x381   :  { %v2180_v44 = vadd.f32 %v3749_v4, %v2179_v39  ;;  %2944 = vmatmul.msk.bf16.gmra.mxu1 %vm1238_vm1, %v1185_v27  ;;  %v1838_v24 = vmax.f32 %v1636_v20, 0.0 }
 0x382   :  { %v930_v13 = vpop.f32.mrf.mxu0 }
 0x383   :  { %v2423_v58 = vmax.f32 %v2422_v30, %v2180_v44  ;;  %v931_v25 = vadd.f32 %v3898_v15, %v930_v13 }
 0x385   :  { %v1106_v36 = vmax.f32 %v931_v25, 0.0 }
 0x386   :  { %v1637_v49 = vpop.f32.mrf.mxu1 }
 0x387   :  { %v1638_v3 = vadd.f32 %v3956_v7, %v1637_v49 }
 0x388   :  { %v2181_v23 = vpop.f32.mrf.mxu2 }
 0x389   :  { %v1839_v26 = vmax.f32 %v1638_v3, 0.0  ;;  %v2182_v28 = vadd.f32 %v3749_v4, %v2181_v23  ;;  %v3989_v3 = vpop.f32.mrf.mxu3 }
 0x38a   :  { %v932_v31 = vpop.f32.mrf.mxu0 }
 0x38b   :  { %v1927_v8 = vpack.c.bf16 %v1839_v26, %v1838_v24  ;;  %v2424_v21 = vmax.f32 %v2423_v58, %v2182_v28  ;;  %v933_v59 = vadd.f32 %v3898_v15, %v932_v31 }
 0x38d   :  { %v1107_v60 = vmax.f32 %v933_v59, 0.0  ;;  %2223 = vmatmul.bf16.gmra.mxu2 %v1927_v8 }
 0x38e   :  { %v1640_v38 = vpop.f32.mrf.mxu1 }
 0x38f   :  { %v1186_v12 = vpack.c.bf16 %v1107_v60, %v1106_v36  ;;  %v1641_v41 = vadd.f32 %v3956_v7, %v1640_v38 }
 0x390   :  { %v2184_v32 = vpop.f32.mrf.mxu2 }
 0x391   :  { %v2185_v53 = vadd.f32 %v3749_v4, %v2184_v32  ;;  %2945 = vmatmul.msk.bf16.gmra.mxu1 %vm1238_vm1, %v1186_v12  ;;  %v1840_v17 = vmax.f32 %v1641_v41, 0.0  ;;  %v3993_v31 = vpop.f32.mrf.mxu3 }
 0x393   :  { %v2425_v9 = vmax.f32 %v2424_v21, %v2185_v53 }
 0x396   :  { %v1642_v11 = vpop.f32.mrf.mxu1 }
 0x397   :  { %v1643_v63 = vadd.f32 %v3956_v7, %v1642_v11 }
 0x398   :  { %v2186_v43 = vpop.f32.mrf.mxu2 }
 0x399   :  { %v1841_v18 = vmax.f32 %v1643_v63, 0.0  ;;  %v2187_v15 = vadd.f32 %v3749_v4, %v2186_v43 }
 0x39b   :  { %v1928_v2 = vpack.c.bf16 %v1841_v18, %v1840_v17  ;;  %v2426_v46 = vmax.f32 %v2425_v9, %v2187_v15  ;;  %v3997_v9 = vpop.f32.mrf.mxu3 }
 0x39d   :  { %v2427_v48 = vrot.slane %v2426_v46, 4  ;;  %2228 = vmatmul.bf16.gmra.mxu2 %v1928_v2 }
 0x39e   :  { %v1645_v61 = vpop.f32.mrf.mxu1 }
 0x39f   :  { %v2428_v50 = vmax.f32 %v2426_v46, %v2427_v48  ;;  %v1646_v45 = vadd.f32 %v3956_v7, %v1645_v61 }
 0x3a0   :  { %v2189_v34 = vpop.f32.mrf.mxu2 }
 0x3a1   :  { %v2429_v51 = vrot.slane %v2428_v50, 2  ;;  %v1842_v40 = vmax.f32 %v1646_v45, 0.0  ;;  %v2190_v37 = vadd.f32 %v3749_v4, %v2189_v34 }
 0x3a3   :  { %v2430_v52 = vmax.f32 %v2428_v50, %v2429_v51  ;;  %v4003_v61 = vpop.f32.mrf.mxu3 }
 0x3a5   :  { %v2431_v54 = vrot.slane %v2430_v52, 1 }
 0x3a6   :  { %v1647_v57 = vpop.f32.mrf.mxu1 }
 0x3a7   :  { %v2432_v62 = vmax.f32 %v2430_v52, %v2431_v54  ;;  %v1648_v29 = vadd.f32 %v3956_v7, %v1647_v57 }
 0x3a8   :  { %v2191_v0 = vpop.f32.mrf.mxu2 }
 0x3a9   :  { %v1843_v33 = vmax.f32 %v1648_v29, 0.0  ;;  %v2192_v14 = vadd.f32 %v3749_v4, %v2191_v0  ;;  %v3981_v35 = vsel %vm2529_vm4, %v2432_v62, %v3877_v1 }
 0x3ab   :  { %v1929_v47 = vpack.c.bf16 %v1843_v33, %v1842_v40  ;;  %v2433_v5 = vmax.f32 %v2190_v37, %v2192_v14  ;;  %v4006_v57 = vpop.f32.mrf.mxu3 }
 0x3ad   :  { %2233 = vmatmul.bf16.gmra.mxu2 %v1929_v47 }
 0x3ae   :  { %v1650_v6 = vpop.f32.mrf.mxu1 }
 0x3af   :  { %v1651_v22 = vadd.f32 %v3956_v7, %v1650_v6 }
 0x3b0   :  { %v2194_v30 = vpop.f32.mrf.mxu2 }
 0x3b1   :  { %v2195_v16 = vadd.f32 %v3749_v4, %v2194_v30  ;;  %v1844_v13 = vmax.f32 %v1651_v22, 0.0 }
 0x3b3   :  { %v2434_v10 = vmax.f32 %v2433_v5, %v2195_v16  ;;  %v4011_v6 = vpop.f32.mrf.mxu3 }
 0x3b6   :  { %v1652_v27 = vpop.f32.mrf.mxu1 }
 0x3b7   :  { %v1653_v39 = vadd.f32 %v3956_v7, %v1652_v27 }
 0x3b8   :  { %v2196_v44 = vpop.f32.mrf.mxu2 }
 0x3b9   :  { %v1845_v58 = vmax.f32 %v1653_v39, 0.0  ;;  %v2197_v1 = vadd.f32 %v3749_v4, %v2196_v44 }
 0x3bb   :  { %v1930_v20 = vpack.c.bf16 %v1845_v58, %v1844_v13  ;;  %v2435_v49 = vmax.f32 %v2434_v10, %v2197_v1  ;;  %v4016_v13 = vpop.f32.mrf.mxu3 }
 0x3bd   :  { %2238 = vmatmul.bf16.gmra.mxu2 %v1930_v20 }
 0x3be   :  { %v1655_v23 = vpop.f32.mrf.mxu1 }
 0x3bf   :  { %v1656_v28 = vadd.f32 %v3956_v7, %v1655_v23 }
 0x3c0   :  { %v2199_v24 = vpop.f32.mrf.mxu2 }
 0x3c1   :  { %v2200_v25 = vadd.f32 %v3749_v4, %v2199_v24  ;;  %v1846_v36 = vmax.f32 %v1656_v28, 0.0 }
 0x3c3   :  { %v2436_v26 = vmax.f32 %v2435_v49, %v2200_v25  ;;  %v4021_v49 = vld [vmem:[%s4179_s6] ss:$0 sm:$0xff]  ;;  %s3119_s6 = smov [#allocation2]  }
 0x3c4   :  { %s2546_s14 = sshll.u32 %s3119_s6, 4  ;;  %s2547_s14 = int_to_ptr.vmem [resolvable:$true] %s2546_s14 }
 0x3c6   :  { %v1657_v8 = vpop.f32.mrf.mxu1 }
 0x3c7   :  { %v1658_v21 = vadd.f32 %v3956_v7, %v1657_v8  ;;  %v4025_v8 = vpop.f32.mrf.mxu3 }
 0x3c8   :  { %v2201_v59 = vpop.f32.mrf.mxu2 }
 0x3c9   :  { %v1847_v60 = vmax.f32 %v1658_v21, 0.0  ;;  %v2202_v38 = vadd.f32 %v3749_v4, %v2201_v59 }
 0x3cb   :  { %v1931_v12 = vpack.c.bf16 %v1847_v60, %v1846_v36  ;;  %v2437_v32 = vmax.f32 %v2436_v26, %v2202_v38 }
 0x3cd   :  { %2243 = vmatmul.bf16.gmra.mxu2 %v1931_v12 }
 0x3ce   :  { %v1660_v53 = vpop.f32.mrf.mxu1 }
 0x3cf   :  { %v1661_v43 = vadd.f32 %v3956_v7, %v1660_v53 }
 0x3d0   :  { %v2204_v41 = vpop.f32.mrf.mxu2 }
 0x3d1   :  { %v2205_v11 = vadd.f32 %v3749_v4, %v2204_v41  ;;  %v1848_v2 = vmax.f32 %v1661_v43, 0.0 }
 0x3d3   :  { %v2438_v63 = vmax.f32 %v2437_v32, %v2205_v11 }
 0x3d6   :  { %v1662_v17 = vpop.f32.mrf.mxu1 }
 0x3d7   :  { %v1663_v18 = vadd.f32 %v3956_v7, %v1662_v17 }
 0x3d8   :  { %v2206_v15 = vpop.f32.mrf.mxu2 }
 0x3d9   :  { %v1849_v46 = vmax.f32 %v1663_v18, 0.0  ;;  %v2207_v48 = vadd.f32 %v3749_v4, %v2206_v15 }
 0x3db   :  { %v1932_v50 = vpack.c.bf16 %v1849_v46, %v1848_v2  ;;  %v2439_v34 = vmax.f32 %v2438_v63, %v2207_v48  ;;  %v4030_v63 = vpop.f32.mrf.mxu3 }
 0x3dd   :  { %2248 = vmatmul.bf16.gmra.mxu2 %v1932_v50 }
 0x3de   :  { %v1665_v51 = vpop.f32.mrf.mxu1 }
 0x3df   :  { %v1666_v62 = vadd.f32 %v3956_v7, %v1665_v51 }
 0x3e0   :  { %v2209_v52 = vpop.f32.mrf.mxu2 }
 0x3e1   :  { %v2210_v45 = vadd.f32 %v3749_v4, %v2209_v52  ;;  %v1850_v37 = vmax.f32 %v1666_v62, 0.0 }
 0x3e3   :  { %v2440_v54 = vmax.f32 %v2439_v34, %v2210_v45  ;;  %v4034_v46 = vpop.f32.mrf.mxu3 }
 0x3e6   :  { %v1667_v29 = vpop.f32.mrf.mxu1 }
 0x3e7   :  { %v1668_v40 = vadd.f32 %v3956_v7, %v1667_v29 }
 0x3e8   :  { %v2211_v0 = vpop.f32.mrf.mxu2 }
 0x3e9   :  { %v1851_v33 = vmax.f32 %v1668_v40, 0.0  ;;  %v2212_v14 = vadd.f32 %v3749_v4, %v2211_v0 }
 0x3eb   :  { %v1933_v47 = vpack.c.bf16 %v1851_v33, %v1850_v37  ;;  %v2441_v5 = vmax.f32 %v2440_v54, %v2212_v14  ;;  %v4038_v0 = vpop.f32.mrf.mxu3 }
 0x3ed   :  { %2253 = vmatmul.bf16.gmra.mxu2 %v1933_v47 }
 0x3ee   :  { %v1670_v30 = vpop.f32.mrf.mxu1 }
 0x3ef   :  { %v1671_v27 = vadd.f32 %v3956_v7, %v1670_v30 }
 0x3f0   :  { %v2214_v16 = vpop.f32.mrf.mxu2 }
 0x3f1   :  { %v2215_v10 = vadd.f32 %v3749_v4, %v2214_v16  ;;  %v1852_v1 = vmax.f32 %v1671_v27, 0.0 }
 0x3f3   :  { %v2442_v22 = vmax.f32 %v2441_v5, %v2215_v10  ;;  %v4045_v27 = vpop.f32.mrf.mxu3 }
 0x3f6   :  { %v1672_v39 = vpop.f32.mrf.mxu1 }
 0x3f7   :  { %v1673_v44 = vadd.f32 %v3956_v7, %v1672_v39 }
 0x3f8   :  { %v2216_v58 = vpop.f32.mrf.mxu2 }
 0x3f9   :  { %v1853_v20 = vmax.f32 %v1673_v44, 0.0  ;;  %v2217_v23 = vadd.f32 %v4021_v49, %v2216_v58 }
 0x3fb   :  { %v1934_v24 = vpack.c.bf16 %v1853_v20, %v1852_v1  ;;  %v2443_v4 = vmax.f32 %v2442_v22, %v2217_v23  ;;  %v4049_v20 = vpop.f32.mrf.mxu3 }
 0x3fd   :  { %2258 = vmatmul.bf16.gmra.mxu2 %v1934_v24 }
 0x3fe   :  { %v1675_v25 = vpop.f32.mrf.mxu1 }
 0x3ff   :  { %v1676_v59 = vadd.f32 %v3956_v7, %v1675_v25 }
 0x400   :  { %v2219_v26 = vpop.f32.mrf.mxu2 }
 0x401   :  { %v2220_v28 = vadd.f32 %v4021_v49, %v2219_v26  ;;  %v1854_v12 = vmax.f32 %v1676_v59, 0.0 }
 0x403   :  { %v2444_v21 = vmax.f32 %v2443_v4, %v2220_v28  ;;  %v4053_v25 = vpop.f32.mrf.mxu3 }
 0x406   :  { %v1677_v36 = vpop.f32.mrf.mxu1 }
 0x407   :  { %v1678_v60 = vadd.f32 %v3956_v7, %v1677_v36 }
 0x408   :  { %v2221_v38 = vpop.f32.mrf.mxu2 }
 0x409   :  { %v1855_v32 = vmax.f32 %v1678_v60, 0.0  ;;  %v2222_v53 = vadd.f32 %v4021_v49, %v2221_v38  ;;  %v1701_v60 = vadd.f32 %v3956_v7, %v3984_v42 }
 0x40b   :  { %v1935_v41 = vpack.c.bf16 %v1855_v32, %v1854_v12  ;;  %v2445_v11 = vmax.f32 %v2444_v21, %v2222_v53  ;;  %v4056_v21 = vpop.f32.mrf.mxu3  ;;  %v1864_v38 = vmax.f32 %v1701_v60, 0.0 }
 0x40d   :  { %2263 = vmatmul.bf16.gmra.mxu2 %v1935_v41 }
 0x40e   :  { %v1680_v43 = vpop.f32.mrf.mxu1 }
 0x40f   :  { %v1681_v2 = vadd.f32 %v3956_v7, %v1680_v43  ;;  %v1708_v43 = vadd.f32 %v3956_v7, %v3997_v9 }
 0x410   :  { %v2224_v17 = vpop.f32.mrf.mxu2 }
 0x411   :  { %v2225_v18 = vadd.f32 %v4021_v49, %v2224_v17  ;;  %v1856_v51 = vmax.f32 %v1681_v2, 0.0 }
 0x413   :  { %v2446_v15 = vmax.f32 %v2445_v11, %v2225_v18  ;;  %v4059_v36 = vpop.f32.mrf.mxu3  ;;  %v1867_v18 = vmax.f32 %v1708_v43, 0.0 }
 0x416   :  { %v1682_v48 = vpop.f32.mrf.mxu1 }
 0x417   :  { %v1683_v50 = vadd.f32 %v3956_v7, %v1682_v48 }
 0x418   :  { %v2226_v34 = vpop.f32.mrf.mxu2 }
 0x419   :  { %v1857_v52 = vmax.f32 %v1683_v50, 0.0  ;;  %v2227_v45 = vadd.f32 %v4021_v49, %v2226_v34  ;;  %v1711_v50 = vadd.f32 %v3956_v7, %v4003_v61  ;;  %v1713_v34 = vadd.f32 %v3956_v7, %v4006_v57 }
 0x41b   :  { %v1936_v54 = vpack.c.bf16 %v1857_v52, %v1856_v51  ;;  %v2447_v62 = vmax.f32 %v2446_v15, %v2227_v45  ;;  %v4065_v41 = vpop.f32.mrf.mxu3  ;;  %v1869_v51 = vmax.f32 %v1713_v34, 0.0 }
 0x41d   :  { %v2448_v29 = vrot.slane %v2447_v62, 4  ;;  %2268 = vmatmul.bf16.vlgmr.msra.gmra.mxu3 %v1936_v54 }
 0x41f   :  { %v2449_v40 = vmax.f32 %v2447_v62, %v2448_v29  ;;  %v1716_v62 = vadd.f32 %v3956_v7, %v4011_v6  ;;  %v1718_v29 = vadd.f32 %v3956_v7, %v4016_v13 }
 0x420   :  { %v2229_v37 = vpop.f32.mrf.mxu2 }
 0x421   :  { %v2450_v33 = vrot.slane %v2449_v40, 2  ;;  %v2230_v16 = vadd.f32 %v4021_v49, %v2229_v37  ;;  %v1870_v37 = vmax.f32 %v1716_v62, 0.0 }
 0x423   :  { %v2451_v14 = vmax.f32 %v2449_v40, %v2450_v33  ;;  %v4071_v17 = vpop.f32.mrf.mxu3  ;;  %v1871_v33 = vmax.f32 %v1718_v29, 0.0 }
 0x425   :  { %v2452_v47 = vrot.slane %v2451_v14, 1 }
 0x427   :  { %v2453_v5 = vmax.f32 %v2451_v14, %v2452_v47 }
 0x428   :  { %v2231_v30 = vpop.f32.mrf.mxu2 }
 0x429   :  { %v2232_v10 = vadd.f32 %v4021_v49, %v2231_v30  ;;  %v4043_v22 = vsel %vm2531_vm5, %v2453_v5, %v3981_v35 }
 0x42b   :  { %v2454_v39 = vmax.f32 %v2230_v16, %v2232_v10  ;;  %v4073_v2 = vpop.f32.mrf.mxu3 }
 0x42d   :  { %2273 = vmatmul.bf16.gmra.mxu3 %v3884_v56 }
 0x430   :  { %v2234_v44 = vpop.f32.mrf.mxu2 }
 0x431   :  { %v2235_v58 = vadd.f32 %v4021_v49, %v2234_v44 }
 0x433   :  { %v2455_v1 = vmax.f32 %v2454_v39, %v2235_v58  ;;  %v4079_v9 = vpop.f32.mrf.mxu3  ;;  %v1943_v39 = vpack.c.bf16 %v1871_v33, %v1870_v37  ;;  %v1731_v33 = vadd.f32 %v3956_v7, %v4045_v27  ;;  %v1738_v27 = vadd.f32 %v3956_v7, %v4056_v21 }
 0x438   :  { %v2236_v23 = vpop.f32.mrf.mxu2 }
 0x439   :  { %v2237_v24 = vadd.f32 %v4021_v49, %v2236_v23 }
 0x43b   :  { %v2456_v4 = vmax.f32 %v2455_v1, %v2237_v24  ;;  %v4086_v61 = vpop.f32.mrf.mxu3 }
 0x43d   :  { %2278 = vmatmul.bf16.gmra.mxu3 %v3905_v19  ;;  %v1703_v19 = vadd.f32 %v3956_v7, %v3989_v3 }
 0x43f   :  { %v1865_v12 = vmax.f32 %v1703_v19, 0.0 }
 0x440   :  { %v2239_v35 = vpop.f32.mrf.mxu2 }
 0x441   :  { %v2240_v26 = vadd.f32 %v4021_v49, %v2239_v35  ;;  %v1940_v53 = vpack.c.bf16 %v1865_v12, %v1864_v38 }
 0x443   :  { %v2457_v28 = vmax.f32 %v2456_v4, %v2240_v26  ;;  %v4093_v58 = vpop.f32.mrf.mxu3  ;;  %v1721_v26 = vadd.f32 %v3956_v7, %v4025_v8 }
 0x445   :  { %v1872_v38 = vmax.f32 %v1721_v26, 0.0 }
 0x448   :  { %v2241_v56 = vpop.f32.mrf.mxu2 }
 0x449   :  { %v2242_v40 = vadd.f32 %v4021_v49, %v2241_v56 }
 0x44b   :  { %v2458_v14 = vmax.f32 %v2457_v28, %v2242_v40  ;;  %v1723_v28 = vadd.f32 %v3956_v7, %v4030_v63 }
 0x44d   :  { %2283 = vmatmul.bf16.gmra.mxu3 %v3921_v55  ;;  %v1706_v55 = vadd.f32 %v3956_v7, %v3993_v31  ;;  %v1868_v31 = vmax.f32 %v1711_v50, 0.0  ;;  %v1873_v12 = vmax.f32 %v1723_v28, 0.0  ;;  %v1728_v50 = vadd.f32 %v3956_v7, %v4038_v0 }
 0x44f   :  { %v1866_v42 = vmax.f32 %v1706_v55, 0.0  ;;  %v1942_v45 = vpack.c.bf16 %v1869_v51, %v1868_v31  ;;  %v1944_v8 = vpack.c.bf16 %v1873_v12, %v1872_v38 }
 0x450   :  { %v2244_v59 = vpop.f32.mrf.mxu2 }
 0x451   :  { %v1941_v3 = vpack.c.bf16 %v1867_v18, %v1866_v42  ;;  %v2245_v57 = vadd.f32 %v4021_v49, %v2244_v59 }
 0x453   :  { %v2459_v30 = vmax.f32 %v2458_v14, %v2245_v57  ;;  %v1733_v14 = vadd.f32 %v3956_v7, %v4049_v20 }
 0x458   :  { %v2246_v32 = vpop.f32.mrf.mxu2 }
 0x459   :  { %v2247_v47 = vadd.f32 %v4021_v49, %v2246_v32 }
 0x45b   :  { %v2460_v10 = vmax.f32 %v2459_v30, %v2247_v47  ;;  %v1877_v30 = vmax.f32 %v1733_v14, 0.0 }
 0x45d   :  { %2288 = vmatmul.bf16.gmra.mxu3 %v1940_v53  ;;  %v4103_v53 = vpop.f32.mrf.mxu3 }
 0x460   :  { %v2249_v11 = vpop.f32.mrf.mxu2 }
 0x461   :  { %v2250_v16 = vadd.f32 %v4021_v49, %v2249_v11 }
 0x463   :  { %v2461_v13 = vmax.f32 %v2460_v10, %v2250_v16 }
 0x468   :  { %v2251_v15 = vpop.f32.mrf.mxu2 }
 0x469   :  { %v2252_v6 = vadd.f32 %v4021_v49, %v2251_v15 }
 0x46b   :  { %v2462_v1 = vmax.f32 %v2461_v13, %v2252_v6 }
 0x46d   :  { %2293 = vmatmul.bf16.gmra.mxu3 %v1941_v3 }
 0x470   :  { %v2254_v48 = vpop.f32.mrf.mxu2 }
 0x471   :  { %v2255_v44 = vadd.f32 %v4021_v49, %v2254_v48  ;;  %v1726_v48 = vadd.f32 %v3956_v7, %v4034_v46 }
 0x473   :  { %v2463_v4 = vmax.f32 %v2462_v1, %v2255_v44  ;;  %v1874_v51 = vmax.f32 %v1726_v48, 0.0  ;;  %v1736_v44 = vadd.f32 %v3956_v7, %v4053_v25  ;;  %v1743_v25 = vadd.f32 %v3956_v7, %v4065_v41 }
 0x475   :  { %v1878_v20 = vmax.f32 %v1736_v44, 0.0 }
 0x478   :  { %v2256_v52 = vpop.f32.mrf.mxu2 }
 0x479   :  { %v2257_v23 = vadd.f32 %v4021_v49, %v2256_v52  ;;  %v1875_v52 = vmax.f32 %v1728_v50, 0.0 }
 0x47b   :  { %v2464_v56 = vmax.f32 %v2463_v4, %v2257_v23  ;;  %v1945_v37 = vpack.c.bf16 %v1875_v52, %v1874_v51  ;;  %v1879_v23 = vmax.f32 %v1738_v27, 0.0 }
 0x47d   :  { %2298 = vmatmul.bf16.gmra.mxu3 %v1942_v45  ;;  %v1947_v26 = vpack.c.bf16 %v1879_v23, %v1878_v20 }
 0x480   :  { %v2259_v54 = vpop.f32.mrf.mxu2 }
 0x481   :  { %v2260_v35 = vadd.f32 %v4021_v49, %v2259_v54 }
 0x483   :  { %v2465_v60 = vmax.f32 %v2464_v56, %v2260_v35 }
 0x488   :  { %v2261_v5 = vpop.f32.mrf.mxu2 }
 0x489   :  { %v2262_v59 = vadd.f32 %v4021_v49, %v2261_v5  ;;  %v1876_v5 = vmax.f32 %v1731_v33, 0.0 }
 0x48b   :  { %v2466_v32 = vmax.f32 %v2465_v60, %v2262_v59  ;;  %v1946_v6 = vpack.c.bf16 %v1877_v30, %v1876_v5  ;;  %v1741_v59 = vadd.f32 %v3956_v7, %v4059_v36  ;;  %v1748_v36 = vadd.f32 %v3956_v7, %v4073_v2 }
 0x48d   :  { %2303 = vmatmul.bf16.gmra.mxu3 %v1943_v39  ;;  %v1880_v21 = vmax.f32 %v1741_v59, 0.0 }
 0x490   :  { %v2264_v24 = vpop.f32.mrf.mxu2 }
 0x491   :  { %v2265_v19 = vadd.f32 %v4021_v49, %v2264_v24 }
 0x493   :  { %v2467_v55 = vmax.f32 %v2466_v32, %v2265_v19  ;;  %v1881_v19 = vmax.f32 %v1743_v25, 0.0 }
 0x498   :  { %v2266_v11 = vpop.f32.mrf.mxu2 }
 0x499   :  { %v2267_v43 = vadd.f32 %v4021_v49, %v2266_v11  ;;  %v1948_v11 = vpack.c.bf16 %v1881_v19, %v1880_v21 }
 0x49b   :  { %v2468_v42 = vmax.f32 %v2467_v55, %v2267_v43 }
 0x49d   :  { %v2469_v18 = vrot.slane %v2468_v42, 4  ;;  %2308 = vmatmul.bf16.gmra.mxu3 %v1944_v8 }
 0x49f   :  { %v2470_v63 = vmax.f32 %v2468_v42, %v2469_v18  ;;  %v1746_v42 = vadd.f32 %v3956_v7, %v4071_v17  ;;  %v1883_v18 = vmax.f32 %v1748_v36, 0.0  ;;  %v1753_v17 = vadd.f32 %v3956_v7, %v4086_v61 }
 0x4a0   :  { %v2269_v15 = vpop.f32.mrf.mxu3 }
 0x4a1   :  { %v2471_v3 = vrot.slane %v2470_v63, 2  ;;  %v2270_v62 = vadd.f32 %v4021_v49, %v2269_v15  ;;  %v1882_v41 = vmax.f32 %v1746_v42, 0.0  ;;  %v1885_v52 = vmax.f32 %v1753_v17, 0.0 }
 0x4a3   :  { %v2472_v34 = vmax.f32 %v2470_v63, %v2471_v3  ;;  %v1949_v48 = vpack.c.bf16 %v1883_v18, %v1882_v41 }
 0x4a5   :  { %v2473_v31 = vrot.slane %v2472_v34, 1 }
 0x4a7   :  { %v2474_v45 = vmax.f32 %v2472_v34, %v2473_v31  ;;  %v1751_v31 = vadd.f32 %v3956_v7, %v4079_v9  ;;  %v1758_v9 = vadd.f32 %v3956_v7, %v4103_v53 }
 0x4a8   :  { %v2271_v54 = vpop.f32.mrf.mxu3 }
 0x4a9   :  { %v2272_v29 = vadd.f32 %v4021_v49, %v2271_v54  ;;  %v4113_v40 = vsel %vm2533_vm6, %v2474_v45, %v4043_v22  ;;  %v1884_v2 = vmax.f32 %v1751_v31, 0.0  ;;  %v1887_v33 = vmax.f32 %v1758_v9, 0.0 }
 0x4ab   :  { %v2475_v57 = vmax.f32 %v2270_v62, %v2272_v29  ;;  %v1950_v29 = vpack.c.bf16 %v1885_v52, %v1884_v2 }
 0x4ad   :  { %2313 = vmatmul.bf16.gmra.mxu3 %v1945_v37 }
 0x4b0   :  { %v2274_v46 = vpop.f32.mrf.mxu3 }
 0x4b1   :  { %v2275_v0 = vadd.f32 %v4021_v49, %v2274_v46  ;;  %v1756_v46 = vadd.f32 %v3956_v7, %v4093_v58 }
 0x4b3   :  { %v2476_v47 = vmax.f32 %v2475_v57, %v2275_v0  ;;  %v1886_v61 = vmax.f32 %v1756_v46, 0.0 }
 0x4b5   :  { %v1951_v30 = vpack.c.bf16 %v1887_v33, %v1886_v61 }
 0x4b8   :  { %v2276_v16 = vpop.f32.mrf.mxu3 }
 0x4b9   :  { %v2277_v10 = vadd.f32 %v4021_v49, %v2276_v16 }
 0x4bb   :  { %v2477_v22 = vmax.f32 %v2476_v47, %v2277_v10 }
 0x4bd   :  { %2318 = vmatmul.bf16.gmra.mxu3 %v1946_v6 }
 0x4c0   :  { %v2279_v39 = vpop.f32.mrf.mxu3 }
 0x4c1   :  { %v2280_v13 = vadd.f32 %v4021_v49, %v2279_v39 }
 0x4c3   :  { %v2478_v1 = vmax.f32 %v2477_v22, %v2280_v13 }
 0x4c8   :  { %v2281_v24 = vpop.f32.mrf.mxu3 }
 0x4c9   :  { %v2282_v4 = vadd.f32 %v4021_v49, %v2281_v24 }
 0x4cb   :  { %v2479_v35 = vmax.f32 %v2478_v1, %v2282_v4 }
 0x4cd   :  { %2323 = vmatmul.bf16.gmra.mxu3 %v1947_v26 }
 0x4d0   :  { %v2284_v28 = vpop.f32.mrf.mxu3 }
 0x4d1   :  { %v2285_v56 = vadd.f32 %v4021_v49, %v2284_v28 }
 0x4d3   :  { %v2480_v60 = vmax.f32 %v2479_v35, %v2285_v56 }
 0x4d8   :  { %v2286_v38 = vpop.f32.mrf.mxu3 }
 0x4d9   :  { %v2287_v12 = vadd.f32 %v4021_v49, %v2286_v38 }
 0x4db   :  { %v2481_v32 = vmax.f32 %v2480_v60, %v2287_v12 }
 0x4dd   :  { %2328 = vmatmul.bf16.gmra.mxu3 %v1948_v11 }
 0x4e0   :  { %v2289_v55 = vpop.f32.mrf.mxu3 }
 0x4e1   :  { %v2290_v43 = vadd.f32 %v4021_v49, %v2289_v55 }
 0x4e3   :  { %v2482_v8 = vmax.f32 %v2481_v32, %v2290_v43 }
 0x4e8   :  { %v2291_v63 = vpop.f32.mrf.mxu3 }
 0x4e9   :  { %v2292_v15 = vadd.f32 %v4021_v49, %v2291_v63 }
 0x4eb   :  { %v2483_v3 = vmax.f32 %v2482_v8, %v2292_v15 }
 0x4ed   :  { %2333 = vmatmul.bf16.gmra.mxu3 %v1949_v48 }
 0x4f0   :  { %v2294_v50 = vpop.f32.mrf.mxu3 }
 0x4f1   :  { %v2295_v34 = vadd.f32 %v4021_v49, %v2294_v50 }
 0x4f3   :  { %v2484_v51 = vmax.f32 %v2483_v3, %v2295_v34 }
 0x4f8   :  { %v2296_v45 = vpop.f32.mrf.mxu3 }
 0x4f9   :  { %v2297_v54 = vadd.f32 %v4021_v49, %v2296_v45 }
 0x4fb   :  { %v2485_v62 = vmax.f32 %v2484_v51, %v2297_v54 }
 0x4fd   :  { %2338 = vmatmul.bf16.gmra.mxu3 %v1950_v29 }
 0x500   :  { %v2299_v57 = vpop.f32.mrf.mxu3 }
 0x501   :  { %v2300_v37 = vadd.f32 %v4021_v49, %v2299_v57 }
 0x503   :  { %v2486_v0 = vmax.f32 %v2485_v62, %v2300_v37 }
 0x508   :  { %v2301_v14 = vpop.f32.mrf.mxu3 }
 0x509   :  { %v2302_v47 = vadd.f32 %v4021_v49, %v2301_v14 }
 0x50b   :  { %v2487_v5 = vmax.f32 %v2486_v0, %v2302_v47 }
 0x50d   :  { %2343 = vmatmul.bf16.gmra.mxu3 %v1951_v30 }
 0x510   :  { %v2304_v16 = vpop.f32.mrf.mxu3 }
 0x511   :  { %v2305_v10 = vadd.f32 %v4021_v49, %v2304_v16 }
 0x513   :  { %v2488_v22 = vmax.f32 %v2487_v5, %v2305_v10 }
 0x518   :  { %v2306_v6 = vpop.f32.mrf.mxu3 }
 0x519   :  { %v2307_v39 = vadd.f32 %v4021_v49, %v2306_v6 }
 0x51b   :  { %v2489_v58 = vmax.f32 %v2488_v22, %v2307_v39 }
 0x51d   :  { %v2490_v13 = vrot.slane %v2489_v58, 4 }
 0x51f   :  { %v2491_v44 = vmax.f32 %v2489_v58, %v2490_v13 }
 0x520   :  { %v2309_v7 = vpop.f32.mrf.mxu3 }
 0x521   :  { %v2492_v53 = vrot.slane %v2491_v44, 2  ;;  %v2310_v24 = vadd.f32 %v4021_v49, %v2309_v7 }
 0x523   :  { %v2493_v27 = vmax.f32 %v2491_v44, %v2492_v53 }
 0x525   :  { %v2494_v1 = vrot.slane %v2493_v27, 1 }
 0x527   :  { %v2495_v20 = vmax.f32 %v2493_v27, %v2494_v1 }
 0x528   :  { %v2311_v23 = vpop.f32.mrf.mxu3 }
 0x529   :  { %v2312_v4 = vadd.f32 %v4021_v49, %v2311_v23  ;;  %v2536_v35 = vsel %vm2535_vm7, %v2495_v20, %v4113_v40 }
 0x52b   :  { %v2496_v26 = vmax.f32 %v2310_v24, %v2312_v4 }
 0x530   :  { %v2314_v28 = vpop.f32.mrf.mxu3 }
 0x531   :  { %v2315_v56 = vadd.f32 %v4021_v49, %v2314_v28 }
 0x533   :  { %v2497_v59 = vmax.f32 %v2496_v26, %v2315_v56 }
 0x538   :  { %v2316_v25 = vpop.f32.mrf.mxu3 }
 0x539   :  { %v2317_v60 = vadd.f32 %v4021_v49, %v2316_v25 }
 0x53b   :  { %v2498_v21 = vmax.f32 %v2497_v59, %v2317_v60 }
 0x540   :  { %v2319_v19 = vpop.f32.mrf.mxu3 }
 0x541   :  { %v2320_v38 = vadd.f32 %v4021_v49, %v2319_v19 }
 0x543   :  { %v2499_v12 = vmax.f32 %v2498_v21, %v2320_v38 }
 0x548   :  { %v2321_v32 = vpop.f32.mrf.mxu3 }
 0x549   :  { %v2322_v41 = vadd.f32 %v4021_v49, %v2321_v32 }
 0x54b   :  { %v2500_v63 = vmax.f32 %v2499_v12, %v2322_v41 }
 0x550   :  { %v2324_v11 = vpop.f32.mrf.mxu3 }
 0x551   :  { %v2325_v18 = vadd.f32 %v4021_v49, %v2324_v11 }
 0x553   :  { %v2501_v48 = vmax.f32 %v2500_v63, %v2325_v18 }
 0x558   :  { %v2326_v55 = vpop.f32.mrf.mxu3 }
 0x559   :  { %v2327_v15 = vadd.f32 %v4021_v49, %v2326_v55 }
 0x55b   :  { %v2502_v34 = vmax.f32 %v2501_v48, %v2327_v15 }
 0x560   :  { %v2329_v43 = vpop.f32.mrf.mxu3 }
 0x561   :  { %v2330_v50 = vadd.f32 %v4021_v49, %v2329_v43 }
 0x563   :  { %v2503_v17 = vmax.f32 %v2502_v34, %v2330_v50 }
 0x568   :  { %v2331_v42 = vpop.f32.mrf.mxu3 }
 0x569   :  { %v2332_v31 = vadd.f32 %v4021_v49, %v2331_v42 }
 0x56b   :  { %v2504_v2 = vmax.f32 %v2503_v17, %v2332_v31 }
 0x570   :  { %v2334_v36 = vpop.f32.mrf.mxu3 }
 0x571   :  { %v2335_v51 = vadd.f32 %v4021_v49, %v2334_v36 }
 0x573   :  { %v2505_v54 = vmax.f32 %v2504_v2, %v2335_v51 }
 0x578   :  { %v2336_v40 = vpop.f32.mrf.mxu3 }
 0x579   :  { %v2337_v52 = vadd.f32 %v4021_v49, %v2336_v40 }
 0x57b   :  { %v2506_v29 = vmax.f32 %v2505_v54, %v2337_v52 }
 0x580   :  { %v2339_v8 = vpop.f32.mrf.mxu3 }
 0x581   :  { %v2340_v62 = vadd.f32 %v4021_v49, %v2339_v8 }
 0x583   :  { %v2507_v37 = vmax.f32 %v2506_v29, %v2340_v62 }
 0x588   :  { %v2341_v3 = vpop.f32.mrf.mxu3 }
 0x589   :  { %v2342_v57 = vadd.f32 %v4021_v49, %v2341_v3 }
 0x58b   :  { %v2508_v9 = vmax.f32 %v2507_v37, %v2342_v57 }
 0x590   :  { %v2344_v45 = vpop.f32.mrf.mxu3 }
 0x591   :  { %v2345_v46 = vadd.f32 %v4021_v49, %v2344_v45 }
 0x593   :  { %v2509_v61 = vmax.f32 %v2508_v9, %v2345_v46 }
 0x598   :  { %v2346_v0 = vpop.f32.mrf.mxu3 }
 0x599   :  { %v2347_v33 = vadd.f32 %v4021_v49, %v2346_v0 }
 0x59b   :  { %v2510_v14 = vmax.f32 %v2509_v61, %v2347_v33 }
 0x59d   :  { %v2511_v47 = vrot.slane %v2510_v14, 4 }
 0x59f   :  { %v2512_v5 = vmax.f32 %v2510_v14, %v2511_v47 }
 0x5a1   :  { %v2513_v30 = vrot.slane %v2512_v5, 2 }
 0x5a3   :  { %v2514_v16 = vmax.f32 %v2512_v5, %v2513_v30 }
 0x5a5   :  { %v2515_v10 = vrot.slane %v2514_v16, 1 }
 0x5a7   :  { %v2516_v22 = vmax.f32 %v2514_v16, %v2515_v10 }
 0x5a9   :  { %v2538_v6 = vsel %vm2537_vm8, %v2516_v22, %v2536_v35 }
 0x5aa   :  { %2540 = vst [vmem:[#allocation2] sm:$0xff] %v2538_v6 }
 0x5ab   :  { %2551 = dma.vmem_to_hbm [thread:$0]  %s2547_s14, 128, %s2549_s17, [#allocation3]  }
 0x5ac   :  { %3117 = dma.done.wait [#allocation3], 128  }
 0x5ad   :  { %3118 = vsyncadd [#allocation3], 4294967168 }
 0x5ae   :  { %2556 = vsyncpa [#allocation3], 1 }

</bundles_post_ra>
